<compile_context>
chip_gen: v7x
topology: tpu7x:2x2x1
jax: 0.10.0
libtpu: 0.0.40
codegen_flags: <defaults>
</compile_context>

<pallas_src>
import functools

import jax
import jax.numpy as jnp
from jax.experimental import pallas as pl
from jax.experimental.pallas import tpu as pltpu  # noqa: F401  (TPU backend assumed)


# ------------------------------ packing helpers --------------------------------

def _block_diag(w):
    """(N, a, b) stacked blocks -> (N*a, N*b) block-diagonal matrix (exact zeros off-diag)."""
    n, a, b = w.shape
    out = jnp.zeros((n, a, n, b), w.dtype)
    out = out.at[jnp.arange(n), :, jnp.arange(n), :].set(w)
    return out.reshape(n * a, n * b)


def _pack_inputs(x, dw, sigma, sp, yp):
    """Fold time into lanes and pack every parameter into one lane-padded slab."""
    N, B, D = dw.shape
    H = sp["w1"].shape[2]
    ND, NH = N * D, N * H

    # time folded into the lane axis: x_bd[:, t*D:(t+1)*D] = x[t]; x[N] never shipped.
    x_bd = jnp.transpose(x[:N], (1, 0, 2)).reshape(B, ND).astype(jnp.float32)
    dw_bd = jnp.transpose(dw, (1, 0, 2)).reshape(B, ND).astype(jnp.float32)

    lane_w = ((max(ND, NH, H) + 127) // 128) * 128
    o_w1, o_w2, o_w3 = 0, ND, ND + NH
    o_w1y = ND + 2 * NH
    o_w2y = o_w1y + ND
    o_vec = o_w2y + H
    o_sel = o_vec + 8
    rows = ((o_sel + N + 7) // 8) * 8

    selT = (jnp.arange(ND)[None, :] // D == jnp.arange(N)[:, None]).astype(jnp.float32)
    sig_diag = jnp.diagonal(sigma, axis1=1, axis2=2).reshape(ND).astype(jnp.float32)

    p = jnp.zeros((rows, lane_w), jnp.float32)
    p = p.at[o_w1:o_w1 + ND, :NH].set(_block_diag(sp["w1"]))
    p = p.at[o_w2:o_w2 + NH, :NH].set(_block_diag(sp["w2"]))
    p = p.at[o_w3:o_w3 + NH, :ND].set(_block_diag(sp["w3"]))
    p = p.at[o_w1y:o_w1y + D, :H].set(yp["w1"])        # rows D..ND stay zero (pad trick)
    p = p.at[o_w2y:o_w2y + H, :H].set(yp["w2"])
    p = p.at[o_vec + 0, :NH].set(sp["b1"].reshape(NH))
    p = p.at[o_vec + 1, :NH].set(sp["b2"].reshape(NH))
    p = p.at[o_vec + 2, :ND].set(sp["b3"].reshape(ND))
    p = p.at[o_vec + 3, :ND].set(sig_diag)
    p = p.at[o_vec + 4, :H].set(yp["b1"].reshape(H))
    p = p.at[o_vec + 5, :H].set(yp["b2"].reshape(H))
    p = p.at[o_vec + 6, :H].set(yp["w3"].reshape(H))   # (H, 1) stored transposed as a row
    p = p.at[o_vec + 7, :1].set(yp["b3"].reshape(1))
    p = p.at[o_sel:o_sel + N, :ND].set(selT)

    kwargs = dict(N=N, D=D, H=H, o_w1=o_w1, o_w2=o_w2, o_w3=o_w3,
                  o_w1y=o_w1y, o_w2y=o_w2y, o_vec=o_vec, o_sel=o_sel)
    return x_bd, dw_bd, p, kwargs


# --------------------------------- kernel --------------------------------------

def nonshared_model_kernel(x_ref, dw_ref, p_ref, y_out_ref, ngl_out_ref, *,
                           N, D, H, delta_t,
                           o_w1, o_w2, o_w3, o_w1y, o_w2y, o_vec, o_sel):
    f32 = jnp.float32
    ND, NH = N * D, N * H

    x_bd = x_ref[...]            # (B, N*D)  lane-dense, time folded into lanes
    dw_bd = dw_ref[...]          # (B, N*D)

    # ---- packed parameter slab: static, tile-aligned ref slices (one DMA) -----
    W1 = p_ref[o_w1:o_w1 + ND, 0:NH]          # block-diag (N*D, N*H)
    W2 = p_ref[o_w2:o_w2 + NH, 0:NH]          # block-diag (N*H, N*H)
    W3 = p_ref[o_w3:o_w3 + NH, 0:ND]          # block-diag (N*H, N*D)
    W1y = p_ref[o_w1y:o_w1y + ND, 0:H]        # y_init layer 1, zero-padded to N*D rows
    W2y = p_ref[o_w2y:o_w2y + H, 0:H]
    b1 = p_ref[o_vec + 0:o_vec + 1, 0:NH]
    b2 = p_ref[o_vec + 1:o_vec + 2, 0:NH]
    b3 = p_ref[o_vec + 2:o_vec + 3, 0:ND]
    sig = p_ref[o_vec + 3:o_vec + 4, 0:ND]    # diag(sigma_t) for every t, lane-packed
    b1y = p_ref[o_vec + 4:o_vec + 5, 0:H]
    b2y = p_ref[o_vec + 5:o_vec + 6, 0:H]
    w3yT = p_ref[o_vec + 6:o_vec + 7, 0:H]    # y_init layer 3 weight, transposed row
    b3y = p_ref[o_vec + 7:o_vec + 8, 0:1]
    selT = p_ref[o_sel:o_sel + N, 0:ND]       # selT[t, t*D + d] = 1  (per-step reduce)

    # ---- y_init subnet on x at t = 0 -------------------------------------------
    # W1y is zero below row D, so x_bd @ W1y == x[0] @ w1y with a full-depth
    # contraction (no narrow lane slice of x needed).
    hy = jnp.maximum(jnp.dot(x_bd, W1y, preferred_element_type=f32) + b1y, 0.0)   # (B, H)
    hy = jnp.maximum(jnp.dot(hy, W2y, preferred_element_type=f32) + b2y, 0.0)     # (B, H)
    # (1,H) . (B,H)^T -> (1,B): y is carried lane-dense (batch on lanes).
    y = jax.lax.dot_general(w3yT, hy, (((1,), (1,)), ((), ())),
                            preferred_element_type=f32) + b3y                     # (1, B)

    my = jnp.minimum(jnp.min(y, axis=1, keepdims=True), 0.0)                      # (1, 1)
    ngl = jnp.sum(my * my)

    # ---- all N per-step subnets: three full-width block-diagonal MXU matmuls ----
    h = jnp.maximum(jnp.dot(x_bd, W1, preferred_element_type=f32) + b1, 0.0)      # (B, N*H)
    h = jnp.maximum(jnp.dot(h, W2, preferred_element_type=f32) + b2, 0.0)         # (B, N*H)
    z = jnp.dot(h, W3, preferred_element_type=f32) + b3                           # (B, N*D)

    # negative-grad loss over every z_t: per-column min over batch, clamp at 0, sum sq.
    mz = jnp.minimum(jnp.min(z, axis=0, keepdims=True), 0.0)                      # (1, N*D)
    ngl = ngl + jnp.sum(mz * mz)

    # diagonal sigma:  z_sigma = z * diag(sigma_t);  zdw[t, b] = sum_d z_sigma * dw
    prod = z * sig * dw_bd                                                        # (B, N*D)
    # per-time-step inner product via selector matmul in NT form -> (N, B) = (8, 128)
    zdw = jax.lax.dot_general(selT, prod, (((1,), (1,)), ((), ())),
                              preferred_element_type=f32)                         # (N, B)

    # ---- sequential Euler recursion: only consumes zdw, lane-dense (1, B) carry ---
    # TODO(synk): bsde.f_torch is problem specific; Allen-Cahn driver f = y - y^3 used.
    # N is small (8) so a static unroll is fine; for N >~ 50 switch to
    # lax.fori_loop(..., unroll=True) reading zdw per step to bound live ranges.
    for t in range(N):
        f = y - y * y * y
        y = y - delta_t * f + zdw[t:t + 1, :]

    y_out_ref[...] = y                                     # (1, B) lane-dense store
    ngl_out_ref[...] = jnp.full((1, 1), ngl, f32)


# -------------------------------- wrapper ---------------------------------------

def nonshared_forward(x, dw, sigma, subnet_params, yinit_params, delta_t):
    """x: (N+1, B, D) time-major; dw: (N, B, D); sigma: (N, D, D) (diagonal per step).

    Returns (y (B, 1), negative_grad_loss scalar) matching NonsharedModel.forward
    with u=None and the Allen-Cahn driver.
    """
    B = x.shape[1]
    x_bd, dw_bd, p, kw = _pack_inputs(x, dw, sigma, subnet_params, yinit_params)

    y_row, ngl = pl.pallas_call(
        functools.partial(nonshared_model_kernel, delta_t=float(delta_t), **kw),
        out_shape=(
            jax.ShapeDtypeStruct((1, B), jnp.float32),   # y (lane-dense; transposed below)
            jax.ShapeDtypeStruct((1, 1), jnp.float32),   # negative_grad_loss
        ),
        # No grid: the whole working set (~1 MiB) is VMEM-resident; 3 input DMAs total.
        # TODO(synk): at production sizes (B~1k, D~100, N~50) add a batch grid with
        # dimension_semantics=("parallel",) (uses both v7x TensorCores) and/or a time
        # grid before the slab approaches the scoped-VMEM limit (64 MiB physical on v7x).
    )(x_bd, dw_bd, p)
    return y_row.T, ngl[0, 0]


# --------------------------- pure-JAX reference ----------------------------------

def reference_forward(x, dw, sigma, sp, yp, delta_t):
    def mlp(xx, p):
        h = jax.nn.relu(xx @ p["w1"] + p["b1"])
        h = jax.nn.relu(h @ p["w2"] + p["b2"])
        return h @ p["w3"] + p["b3"]

    def ngl_fn(v):
        m = jnp.minimum(jnp.min(v, axis=0, keepdims=True), 0.0)
        return jnp.sum(m * m)

    y = mlp(x[0], yp)
    ngl = ngl_fn(y)
    for t in range(dw.shape[0]):
        pt = {k: sp[k][t] for k in sp}
        z = mlp(x[t], pt)
        ngl = ngl + ngl_fn(z)
        z_sigma = z @ sigma[t]
        f = y - y ** 3
        y = y - delta_t * f + jnp.sum(z_sigma * dw[t], axis=1, keepdims=True)
    return y, ngl


# ----------------------------------- main ----------------------------------------

if __name__ == "__main__":
    # batch, equation dim, hidden width, time intervals
    B, D, H, N = 128, 16, 32, 8
    total_time = 1.0
    delta_t = total_time / N

    key = jax.random.PRNGKey(0)
    keys = jax.random.split(key, 16)

    # state / Brownian increments (time-major layout)
    x = jax.random.normal(keys[0], (N + 1, B, D), jnp.float32)
    dw = jax.random.normal(keys[1], (N, B, D), jnp.float32) * jnp.sqrt(delta_t)

    # sigma = scalar * eye(dim) repeated over time (scalar-sigma branch of __init__)
    sigma_scalar = 0.5
    sigma = jnp.tile((sigma_scalar * jnp.eye(D, dtype=jnp.float32))[None], (N, 1, 1))

    def init_scale(k, shape, fan_in):
        return jax.random.normal(k, shape, jnp.float32) * (1.0 / jnp.sqrt(float(fan_in)))

    # per-time-step subnet parameters (stacked along time)
    subnet_params = {
        "w1": init_scale(keys[2], (N, D, H), D),
        "b1": jnp.zeros((N, 1, H), jnp.float32),
        "w2": init_scale(keys[3], (N, H, H), H),
        "b2": jnp.zeros((N, 1, H), jnp.float32),
        "w3": init_scale(keys[4], (N, H, D), H),
        "b3": jnp.zeros((N, 1, D), jnp.float32),
    }
    # y_init subnet (output dim = 1)
    yinit_params = {
        "w1": init_scale(keys[5], (D, H), D),
        "b1": jnp.zeros((1, H), jnp.float32),
        "w2": init_scale(keys[6], (H, H), H),
        "b2": jnp.zeros((1, H), jnp.float32),
        "w3": init_scale(keys[7], (H, 1), H),
        "b3": jnp.zeros((1, 1), jnp.float32),
    }

    y_pl, loss_pl = nonshared_forward(x, dw, sigma, subnet_params, yinit_params, delta_t)
    jax.block_until_ready((y_pl, loss_pl))

    y_ref, loss_ref = reference_forward(x, dw, sigma, subnet_params, yinit_params, delta_t)

    assert jnp.allclose(y_pl, y_ref, rtol=1e-4, atol=1e-4), "y mismatch"
    assert jnp.allclose(loss_pl, loss_ref, rtol=1e-4, atol=1e-4), "loss mismatch"

    print("KERNEL_OK")
</pallas_src>

<mosaic_0001>
module attributes {stable_mosaic.version = 11 : i64} {
  func.func @nonshared_model_kernel(%arg0: memref<128x128xf32, #tpu.memory_space<vmem>>, %arg1: memref<128x128xf32, #tpu.memory_space<vmem>>, %arg2: memref<816x256xf32, #tpu.memory_space<vmem>>, %arg3: memref<1x128xf32, #tpu.memory_space<vmem>>, %arg4: memref<1x1xf32, #tpu.memory_space<vmem>>) attributes {dimension_semantics = [], scalar_prefetch = 0 : i64, scratch_operands = 0 : i64, tpu.core_type = #tpu.core_type<tc>} {
    %c0 = arith.constant 0 : index
    %c0_0 = arith.constant 0 : index
    %0 = vector.load %arg0[%c0, %c0_0] : memref<128x128xf32, #tpu.memory_space<vmem>>, vector<128x128xf32>
    %c0_1 = arith.constant 0 : index
    %c0_2 = arith.constant 0 : index
    %1 = vector.load %arg1[%c0_1, %c0_2] : memref<128x128xf32, #tpu.memory_space<vmem>>, vector<128x128xf32>
    %c0_3 = arith.constant 0 : index
    %c0_4 = arith.constant 0 : index
    %2 = vector.load %arg2[%c0_3, %c0_4] : memref<816x256xf32, #tpu.memory_space<vmem>>, vector<128x256xf32>
    %c128 = arith.constant 128 : index
    %c0_5 = arith.constant 0 : index
    %3 = vector.load %arg2[%c128, %c0_5] : memref<816x256xf32, #tpu.memory_space<vmem>>, vector<256x256xf32>
    %c384 = arith.constant 384 : index
    %c0_6 = arith.constant 0 : index
    %4 = vector.load %arg2[%c384, %c0_6] : memref<816x256xf32, #tpu.memory_space<vmem>>, vector<256x128xf32>
    %c640 = arith.constant 640 : index
    %c0_7 = arith.constant 0 : index
    %5 = vector.load %arg2[%c640, %c0_7] : memref<816x256xf32, #tpu.memory_space<vmem>>, vector<128x32xf32>
    %c768 = arith.constant 768 : index
    %c0_8 = arith.constant 0 : index
    %6 = vector.load %arg2[%c768, %c0_8] : memref<816x256xf32, #tpu.memory_space<vmem>>, vector<32x32xf32>
    %c800 = arith.constant 800 : index
    %c0_9 = arith.constant 0 : index
    %7 = vector.load %arg2[%c800, %c0_9] : memref<816x256xf32, #tpu.memory_space<vmem>>, vector<1x256xf32>
    %c801 = arith.constant 801 : index
    %c0_10 = arith.constant 0 : index
    %8 = vector.load %arg2[%c801, %c0_10] : memref<816x256xf32, #tpu.memory_space<vmem>>, vector<1x256xf32>
    %c802 = arith.constant 802 : index
    %c0_11 = arith.constant 0 : index
    %9 = vector.load %arg2[%c802, %c0_11] : memref<816x256xf32, #tpu.memory_space<vmem>>, vector<1x128xf32>
    %c803 = arith.constant 803 : index
    %c0_12 = arith.constant 0 : index
    %10 = vector.load %arg2[%c803, %c0_12] : memref<816x256xf32, #tpu.memory_space<vmem>>, vector<1x128xf32>
    %c804 = arith.constant 804 : index
    %c0_13 = arith.constant 0 : index
    %11 = vector.load %arg2[%c804, %c0_13] : memref<816x256xf32, #tpu.memory_space<vmem>>, vector<1x32xf32>
    %c805 = arith.constant 805 : index
    %c0_14 = arith.constant 0 : index
    %12 = vector.load %arg2[%c805, %c0_14] : memref<816x256xf32, #tpu.memory_space<vmem>>, vector<1x32xf32>
    %c806 = arith.constant 806 : index
    %c0_15 = arith.constant 0 : index
    %13 = vector.load %arg2[%c806, %c0_15] : memref<816x256xf32, #tpu.memory_space<vmem>>, vector<1x32xf32>
    %c807 = arith.constant 807 : index
    %c0_16 = arith.constant 0 : index
    %14 = vector.load %arg2[%c807, %c0_16] : memref<816x256xf32, #tpu.memory_space<vmem>>, vector<1x1xf32>
    %c808 = arith.constant 808 : index
    %c0_17 = arith.constant 0 : index
    %15 = vector.load %arg2[%c808, %c0_17] : memref<816x256xf32, #tpu.memory_space<vmem>>, vector<8x128xf32>
    %cst = arith.constant dense<0.000000e+00> : vector<128x32xf32>
    %16 = tpu.matmul %0, %5, %cst {dimension_numbers = #tpu.dot_dimension_numbers<[1], [0], [0], [1], [0, 0, 1, 1], [], []>} : vector<128x128xf32>, vector<128x32xf32>, vector<128x32xf32> -> vector<128x32xf32>
    %17 = vector.broadcast %11 : vector<1x32xf32> to vector<128x32xf32>
    %18 = arith.addf %16, %17 : vector<128x32xf32>
    %cst_18 = arith.constant 0.000000e+00 : f32
    %19 = vector.broadcast %cst_18 : f32 to vector<128x32xf32>
    %20 = arith.maximumf %18, %19 : vector<128x32xf32>
    %cst_19 = arith.constant dense<0.000000e+00> : vector<128x32xf32>
    %21 = tpu.matmul %20, %6, %cst_19 {dimension_numbers = #tpu.dot_dimension_numbers<[1], [0], [0], [1], [0, 0, 1, 1], [], []>} : vector<128x32xf32>, vector<32x32xf32>, vector<128x32xf32> -> vector<128x32xf32>
    %22 = vector.broadcast %12 : vector<1x32xf32> to vector<128x32xf32>
    %23 = arith.addf %21, %22 : vector<128x32xf32>
    %cst_20 = arith.constant 0.000000e+00 : f32
    %24 = vector.broadcast %cst_20 : f32 to vector<128x32xf32>
    %25 = arith.maximumf %23, %24 : vector<128x32xf32>
    %cst_21 = arith.constant dense<0.000000e+00> : vector<1x128xf32>
    %26 = tpu.matmul %13, %25, %cst_21 {dimension_numbers = #tpu.dot_dimension_numbers<[1], [1], [0], [0], [0, 0, 1, 0], [], []>} : vector<1x32xf32>, vector<128x32xf32>, vector<1x128xf32> -> vector<1x128xf32>
    %27 = vector.broadcast %14 : vector<1x1xf32> to vector<1x128xf32>
    %28 = arith.addf %26, %27 : vector<1x128xf32>
    %cst_22 = arith.constant dense<0x7F800000> : vector<1xf32>
    %29 = vector.multi_reduction <minimumf>, %28, %cst_22 [1] : vector<1x128xf32> to vector<1xf32>
    %30 = vector.shape_cast %29 : vector<1xf32> to vector<1x1xf32>
    %cst_23 = arith.constant 0.000000e+00 : f32
    %31 = vector.broadcast %cst_23 : f32 to vector<1x1xf32>
    %32 = arith.minimumf %30, %31 : vector<1x1xf32>
    %33 = arith.mulf %32, %32 : vector<1x1xf32>
    %34 = vector.shape_cast %33 : vector<1x1xf32> to vector<1x1x1xf32>
    %cst_24 = arith.constant dense<0.000000e+00> : vector<1xf32>
    %35 = vector.multi_reduction <add>, %34, %cst_24 [1, 2] : vector<1x1x1xf32> to vector<1xf32>
    %36 = vector.shape_cast %35 : vector<1xf32> to vector<1x1x1xf32>
    %37 = vector.extract %36[0, 0, 0] : f32 from vector<1x1x1xf32>
    %cst_25 = arith.constant dense<0.000000e+00> : vector<128x256xf32>
    %38 = tpu.matmul %0, %2, %cst_25 {dimension_numbers = #tpu.dot_dimension_numbers<[1], [0], [0], [1], [0, 0, 1, 1], [], []>} : vector<128x128xf32>, vector<128x256xf32>, vector<128x256xf32> -> vector<128x256xf32>
    %39 = vector.broadcast %7 : vector<1x256xf32> to vector<128x256xf32>
    %40 = arith.addf %38, %39 : vector<128x256xf32>
    %cst_26 = arith.constant 0.000000e+00 : f32
    %41 = vector.broadcast %cst_26 : f32 to vector<128x256xf32>
    %42 = arith.maximumf %40, %41 : vector<128x256xf32>
    %cst_27 = arith.constant dense<0.000000e+00> : vector<128x256xf32>
    %43 = tpu.matmul %42, %3, %cst_27 {dimension_numbers = #tpu.dot_dimension_numbers<[1], [0], [0], [1], [0, 0, 1, 1], [], []>} : vector<128x256xf32>, vector<256x256xf32>, vector<128x256xf32> -> vector<128x256xf32>
    %44 = vector.broadcast %8 : vector<1x256xf32> to vector<128x256xf32>
    %45 = arith.addf %43, %44 : vector<128x256xf32>
    %cst_28 = arith.constant 0.000000e+00 : f32
    %46 = vector.broadcast %cst_28 : f32 to vector<128x256xf32>
    %47 = arith.maximumf %45, %46 : vector<128x256xf32>
    %cst_29 = arith.constant dense<0.000000e+00> : vector<128x128xf32>
    %48 = tpu.matmul %47, %4, %cst_29 {dimension_numbers = #tpu.dot_dimension_numbers<[1], [0], [0], [1], [0, 0, 1, 1], [], []>} : vector<128x256xf32>, vector<256x128xf32>, vector<128x128xf32> -> vector<128x128xf32>
    %49 = vector.broadcast %9 : vector<1x128xf32> to vector<128x128xf32>
    %50 = arith.addf %48, %49 : vector<128x128xf32>
    %cst_30 = arith.constant dense<0x7F800000> : vector<128xf32>
    %51 = vector.multi_reduction <minimumf>, %50, %cst_30 [0] : vector<128x128xf32> to vector<128xf32>
    %52 = vector.shape_cast %51 : vector<128xf32> to vector<1x128xf32>
    %cst_31 = arith.constant 0.000000e+00 : f32
    %53 = vector.broadcast %cst_31 : f32 to vector<1x128xf32>
    %54 = arith.minimumf %52, %53 : vector<1x128xf32>
    %55 = arith.mulf %54, %54 : vector<1x128xf32>
    %56 = vector.shape_cast %55 : vector<1x128xf32> to vector<1x1x128xf32>
    %cst_32 = arith.constant dense<0.000000e+00> : vector<1xf32>
    %57 = vector.multi_reduction <add>, %56, %cst_32 [1, 2] : vector<1x1x128xf32> to vector<1xf32>
    %58 = vector.shape_cast %57 : vector<1xf32> to vector<1x1x1xf32>
    %59 = vector.extract %58[0, 0, 0] : f32 from vector<1x1x1xf32>
    %60 = arith.addf %37, %59 : f32
    %61 = vector.broadcast %10 : vector<1x128xf32> to vector<128x128xf32>
    %62 = arith.mulf %50, %61 : vector<128x128xf32>
    %63 = arith.mulf %62, %1 : vector<128x128xf32>
    %cst_33 = arith.constant dense<0.000000e+00> : vector<8x128xf32>
    %64 = tpu.matmul %15, %63, %cst_33 {dimension_numbers = #tpu.dot_dimension_numbers<[1], [1], [0], [0], [0, 0, 1, 0], [], []>} : vector<8x128xf32>, vector<128x128xf32>, vector<8x128xf32> -> vector<8x128xf32>
    %65 = arith.mulf %28, %28 : vector<1x128xf32>
    %66 = arith.mulf %65, %28 : vector<1x128xf32>
    %67 = arith.subf %28, %66 : vector<1x128xf32>
    %cst_34 = arith.constant 1.250000e-01 : f32
    %68 = vector.broadcast %cst_34 : f32 to vector<1x128xf32>
    %69 = arith.mulf %68, %67 : vector<1x128xf32>
    %70 = arith.subf %28, %69 : vector<1x128xf32>
    %71 = vector.extract_strided_slice %64 {offsets = [0, 0], sizes = [1, 128], strides = [1, 1]} : vector<8x128xf32> to vector<1x128xf32>
    %72 = arith.addf %70, %71 : vector<1x128xf32>
    %73 = arith.mulf %72, %72 : vector<1x128xf32>
    %74 = arith.mulf %73, %72 : vector<1x128xf32>
    %75 = arith.subf %72, %74 : vector<1x128xf32>
    %cst_35 = arith.constant 1.250000e-01 : f32
    %76 = vector.broadcast %cst_35 : f32 to vector<1x128xf32>
    %77 = arith.mulf %76, %75 : vector<1x128xf32>
    %78 = arith.subf %72, %77 : vector<1x128xf32>
    %79 = vector.extract_strided_slice %64 {offsets = [1, 0], sizes = [1, 128], strides = [1, 1]} : vector<8x128xf32> to vector<1x128xf32>
    %80 = arith.addf %78, %79 : vector<1x128xf32>
    %81 = arith.mulf %80, %80 : vector<1x128xf32>
    %82 = arith.mulf %81, %80 : vector<1x128xf32>
    %83 = arith.subf %80, %82 : vector<1x128xf32>
    %cst_36 = arith.constant 1.250000e-01 : f32
    %84 = vector.broadcast %cst_36 : f32 to vector<1x128xf32>
    %85 = arith.mulf %84, %83 : vector<1x128xf32>
    %86 = arith.subf %80, %85 : vector<1x128xf32>
    %87 = vector.extract_strided_slice %64 {offsets = [2, 0], sizes = [1, 128], strides = [1, 1]} : vector<8x128xf32> to vector<1x128xf32>
    %88 = arith.addf %86, %87 : vector<1x128xf32>
    %89 = arith.mulf %88, %88 : vector<1x128xf32>
    %90 = arith.mulf %89, %88 : vector<1x128xf32>
    %91 = arith.subf %88, %90 : vector<1x128xf32>
    %cst_37 = arith.constant 1.250000e-01 : f32
    %92 = vector.broadcast %cst_37 : f32 to vector<1x128xf32>
    %93 = arith.mulf %92, %91 : vector<1x128xf32>
    %94 = arith.subf %88, %93 : vector<1x128xf32>
    %95 = vector.extract_strided_slice %64 {offsets = [3, 0], sizes = [1, 128], strides = [1, 1]} : vector<8x128xf32> to vector<1x128xf32>
    %96 = arith.addf %94, %95 : vector<1x128xf32>
    %97 = arith.mulf %96, %96 : vector<1x128xf32>
    %98 = arith.mulf %97, %96 : vector<1x128xf32>
    %99 = arith.subf %96, %98 : vector<1x128xf32>
    %cst_38 = arith.constant 1.250000e-01 : f32
    %100 = vector.broadcast %cst_38 : f32 to vector<1x128xf32>
    %101 = arith.mulf %100, %99 : vector<1x128xf32>
    %102 = arith.subf %96, %101 : vector<1x128xf32>
    %103 = vector.extract_strided_slice %64 {offsets = [4, 0], sizes = [1, 128], strides = [1, 1]} : vector<8x128xf32> to vector<1x128xf32>
    %104 = arith.addf %102, %103 : vector<1x128xf32>
    %105 = arith.mulf %104, %104 : vector<1x128xf32>
    %106 = arith.mulf %105, %104 : vector<1x128xf32>
    %107 = arith.subf %104, %106 : vector<1x128xf32>
    %cst_39 = arith.constant 1.250000e-01 : f32
    %108 = vector.broadcast %cst_39 : f32 to vector<1x128xf32>
    %109 = arith.mulf %108, %107 : vector<1x128xf32>
    %110 = arith.subf %104, %109 : vector<1x128xf32>
    %111 = vector.extract_strided_slice %64 {offsets = [5, 0], sizes = [1, 128], strides = [1, 1]} : vector<8x128xf32> to vector<1x128xf32>
    %112 = arith.addf %110, %111 : vector<1x128xf32>
    %113 = arith.mulf %112, %112 : vector<1x128xf32>
    %114 = arith.mulf %113, %112 : vector<1x128xf32>
    %115 = arith.subf %112, %114 : vector<1x128xf32>
    %cst_40 = arith.constant 1.250000e-01 : f32
    %116 = vector.broadcast %cst_40 : f32 to vector<1x128xf32>
    %117 = arith.mulf %116, %115 : vector<1x128xf32>
    %118 = arith.subf %112, %117 : vector<1x128xf32>
    %119 = vector.extract_strided_slice %64 {offsets = [6, 0], sizes = [1, 128], strides = [1, 1]} : vector<8x128xf32> to vector<1x128xf32>
    %120 = arith.addf %118, %119 : vector<1x128xf32>
    %121 = arith.mulf %120, %120 : vector<1x128xf32>
    %122 = arith.mulf %121, %120 : vector<1x128xf32>
    %123 = arith.subf %120, %122 : vector<1x128xf32>
    %cst_41 = arith.constant 1.250000e-01 : f32
    %124 = vector.broadcast %cst_41 : f32 to vector<1x128xf32>
    %125 = arith.mulf %124, %123 : vector<1x128xf32>
    %126 = arith.subf %120, %125 : vector<1x128xf32>
    %127 = vector.extract_strided_slice %64 {offsets = [7, 0], sizes = [1, 128], strides = [1, 1]} : vector<8x128xf32> to vector<1x128xf32>
    %128 = arith.addf %126, %127 : vector<1x128xf32>
    %c0_42 = arith.constant 0 : index
    %c0_43 = arith.constant 0 : index
    %129 = vector.load %arg3[%c0_42, %c0_43] : memref<1x128xf32, #tpu.memory_space<vmem>>, vector<1x128xf32>
    tpu.vector_store %arg3[%c0_42, %c0_43], %128 {strides = array<i32>} : memref<1x128xf32, #tpu.memory_space<vmem>>, vector<1x128xf32>,
    %130 = vector.broadcast %60 : f32 to vector<1x1xf32>
    %c0_44 = arith.constant 0 : index
    %c0_45 = arith.constant 0 : index
    %131 = vector.load %arg4[%c0_44, %c0_45] : memref<1x1xf32, #tpu.memory_space<vmem>>, vector<1x1xf32>
    tpu.vector_store %arg4[%c0_44, %c0_45], %130 {strides = array<i32>} : memref<1x1xf32, #tpu.memory_space<vmem>>, vector<1x1xf32>,
    return
  }
}

</mosaic_0001>

<bundles_post_ra>
// kernel: tpu_custom_call.1
= control target key start
LH: loop header
LB: loop body
LE: loop exit
PB: predicated region body
PF: predicated region fallthrough
CT: control target
= control target key end

     0   :  { %10 = vsyncpa [#allocation3], 0  ;;  %s2763_s0 = inlined_call_operand.hbm [shape: f32[128,128], index: 0, kind: input, shape index: {}]   ;;  %s2764_s1 = inlined_call_operand.hbm [shape: f32[128,128], index: 1, kind: input, shape index: {}]   ;;  %s2765_s2 = inlined_call_operand.hbm [shape: f32[816,256], index: 2, kind: input, shape index: {}]   ;;  %s2766_s3 = inlined_call_operand.hbm [shape: f32[1,128], index: 3, kind: output, shape index: {0}]   ;;  %s2767_s4 = inlined_call_operand.hbm [shape: f32[1,1], index: 4, kind: output, shape index: {1}]  }
   0x1   :  { %11 = vsyncpa [#allocation6], 0 }
   0x2   :  { %12 = vsyncpa [#allocation4], 0 }
   0x3   :  { %13 = vsyncpa [#allocation10], 0  ;;  %s2258_s15 = smov [#allocation5]   ;;  %s2259_s17 = smov [#allocation2]  }
   0x4   :  { %s31_s16 = sshll.u32 %s2258_s15, 4  ;;  %s19_s18 = sshll.u32 %s2259_s17, 4  ;;  %s32_s16 = int_to_ptr.vmem [resolvable:$true] %s31_s16  ;;  %s2296_s18 = int_to_ptr.vmem [resolvable:$true] %s19_s18 }
   0x5   :  { %s2140_s21 = scalar_lea.hbm %s2764_s1, 2048 }
   0x6   :  { %p2141_p0 = scmp.ne.s32.totalorder %s2764_s1, %s2140_s21  ;;  %p2144_p1 = scmp.lt.u32.totalorder %s2140_s21, %s2764_s1 }
   0x8   :  { %p2146_p2 = pnand %p2144_p1, %p2141_p0 }
   0xa   :  { %2149 = shalt.err (!%p2146_p2)
}
   0xb   :  { %s2150_s26 = scalar_lea.vmem %s32_s16, 2048  ;;  %p2155_p4 = scmp.lt.s32.totalorder %s32_s16, %s32_s16 }
   0xc   :  { %p2151_p3 = scmp.ne.s32.totalorder %s32_s16, %s2150_s26  ;;  %p2156_p5 = scmp.lt.s32.totalorder %s2150_s26, %s2150_s26 }
   0xe   :  { %p2157_p6 = por %p2156_p5, %p2155_p4 }
  0x10   :  { %p2158_p7 = pnand %p2157_p6, %p2151_p3 }
  0x12   :  { %2161 = shalt.err (!%p2158_p7)
}
  0x13   :  { %s2260_s27 = smov 128   ;;  %s2261_s28 = smov 8  }
  0x14   :  { %37 = dma.hbm_to_vmem [thread:$0]  %s2764_s1, 2048, %s32_s16, [#allocation6], %s2260_s27, %s2260_s27, %s2261_s28  }
  0x15   :  { %s2162_s7 = scalar_lea.hbm %s2763_s0, 2048 }
  0x16   :  { %p2163_p8 = scmp.ne.s32.totalorder %s2763_s0, %s2162_s7  ;;  %p2166_p9 = scmp.lt.u32.totalorder %s2162_s7, %s2763_s0 }
  0x18   :  { %p2168_p10 = pnand %p2166_p9, %p2163_p8 }
  0x1a   :  { %2171 = shalt.err (!%p2168_p10)
}
  0x1b   :  { %s2172_s12 = scalar_lea.vmem %s2296_s18, 2048  ;;  %p2177_p12 = scmp.lt.s32.totalorder %s2296_s18, %s2296_s18 }
  0x1c   :  { %p2173_p11 = scmp.ne.s32.totalorder %s2296_s18, %s2172_s12  ;;  %p2178_p13 = scmp.lt.s32.totalorder %s2172_s12, %s2172_s12 }
  0x1e   :  { %p2179_p0 = por %p2178_p13, %p2177_p12 }
  0x20   :  { %p2180_p1 = pnand %p2179_p0, %p2173_p11 }
  0x22   :  { %2183 = shalt.err (!%p2180_p1)
}
  0x23   :  { %25 = dma.hbm_to_vmem [thread:$0]  %s2763_s0, 2048, %s2296_s18, [#allocation3], %s2260_s27, %s2260_s27, %s2261_s28  }
  0x24   :  { %s2262_s14 = smov [#allocation7]   ;;  %s2184_s19 = scalar_lea.hbm %s2765_s2, 26112 }
  0x25   :  { %s43_s15 = sshll.u32 %s2262_s14, 4  ;;  %p2185_p2 = scmp.ne.s32.totalorder %s2765_s2, %s2184_s19  ;;  %s44_s15 = int_to_ptr.vmem [resolvable:$true] %s43_s15 }
  0x26   :  { %p2188_p3 = scmp.lt.u32.totalorder %s2184_s19, %s2765_s2 }
  0x28   :  { %p2190_p4 = pnand %p2188_p3, %p2185_p2 }
  0x2a   :  { %2193 = shalt.err (!%p2190_p4)
}
  0x2b   :  { %s2194_s24 = scalar_lea.vmem %s44_s15, 26112  ;;  %p2199_p6 = scmp.lt.s32.totalorder %s44_s15, %s44_s15 }
  0x2c   :  { %p2195_p5 = scmp.ne.s32.totalorder %s44_s15, %s2194_s24  ;;  %p2200_p7 = scmp.lt.s32.totalorder %s2194_s24, %s2194_s24 }
  0x2e   :  { %p2201_p8 = por %p2200_p7, %p2199_p6 }
  0x30   :  { %p2202_p9 = pnand %p2201_p8, %p2195_p5 }
  0x32   :  { %2205 = shalt.err (!%p2202_p9)
}
  0x33   :  { %s2263_s0 = smov 256   ;;  %s2264_s18 = smov 16  }
  0x34   :  { %49 = dma.hbm_to_vmem [thread:$0]  %s2765_s2, 26112, %s44_s15, [#allocation6], %s2263_s0, %s2263_s0, %s2264_s18  }
  0x35   :  { %2250 = dma.done.wait [#allocation3], 2048  }
  0x36   :  { %2251 = vsyncadd [#allocation3], 4294965248 }
  0x37   :  { %2252 = dma.done.wait [#allocation6], 28160  }
  0x38   :  { %2253 = vsyncadd [#allocation6], 4294939136  ;;  %v219_v0 = vld [vmem:[#allocation7 + $0x500] sm:$0xff]  ;;  %v220_v1 = vld [vmem:[#allocation7 + $0x510] sm:$0xff]  ;;  %vm411_vm0 = vcmask 261120   ;;  %vm2267_vm1 = vmmov 0  }
  0x39   :  { %v221_v2 = vld [vmem:[#allocation7 + $0x520] sm:$0xff]  ;;  %v1898_v3 = vpack.c.bf16 %v220_v1, %v219_v0  ;;  %v222_v4 = vld [vmem:[#allocation7 + $0x530] sm:$0xff]  ;;  %v92_v28 = vld [vmem:[#allocation7 + $0x8] sm:$0xff]  ;;  %vm747_vm3 = vcmask 1040384   ;;  %s2269_s27 = smov [#allocation9]   ;;  %vm1509_vm4 = vcmask 0  }
  0x3a   :  { %v1902_v5 = vpack.c.bf16 %v222_v4, %v221_v2  ;;  %v223_v6 = vld [vmem:[#allocation7 + $0x540] sm:$0xff]  ;;  %v224_v7 = vld [vmem:[#allocation7 + $0x550] sm:$0xff]  ;;  %v94_v29 = vld [vmem:[#allocation7 + $0x18] sm:$0xff]  ;;  %s1527_s28 = sshll.u32 %s2269_s27, 4  ;;  %s1528_s28 = int_to_ptr.vmem [resolvable:$true] %s1527_s28 }
  0x3b   :  { %1899 = vmatprep.subr.bf16.mxu0 %v1898_v3  ;;  %v1906_v8 = vpack.c.bf16 %v224_v7, %v223_v6  ;;  %v2339_v9 = vld [vmem:[#allocation2] sm:$0xff]  ;;  %v226_v11 = vld [vmem:[#allocation7 + $0x570] sm:$0xff]  ;;  %v1970_v30 = vpack.c.bf16 %v94_v29, %v92_v28  ;;  %v96_v33 = vld [vmem:[#allocation7 + $0x28] sm:$0xff]  ;;  %v2265_v28 = vmov 0.0   ;;  %s2206_s5 = scalar_lea.vmem %s1528_s28, 16  ;;  %s2210_s6 = scalar_lea.vmem %s1528_s28, 32 }
  0x3c   :  { %1901 = vmatpush3.bf16.msra.mxu0 %v1898_v3  ;;  %v225_v10 = vld [vmem:[#allocation7 + $0x560] sm:$0xff]  ;;  %1772 = vmatprep.mubr.f32.mxu0 %v2339_v9  ;;  %v228_v14 = vld [vmem:[#allocation7 + $0x590] sm:$0xff]  ;;  %v98_v34 = vld [vmem:[#allocation7 + $0x38] sm:$0xff]  ;;  %p2207_p10 = scmp.ne.s32.totalorder %s1528_s28, %s2206_s5  ;;  %p2211_p11 = scmp.lt.s32.totalorder %s1528_s28, %s1528_s28 }
  0x3d   :  { %1903 = vmatprep.subr.bf16.mxu0 %v1902_v5  ;;  %v1910_v12 = vpack.c.bf16 %v226_v11, %v225_v10  ;;  %v227_v13 = vld [vmem:[#allocation7 + $0x580] sm:$0xff]  ;;  %v230_v17 = vld [vmem:[#allocation7 + $0x5b0] sm:$0xff]  ;;  %v2342_v35 = vld [vmem:[#allocation2 + $0x8] sm:$0xff]  ;;  %v1974_v38 = vpack.c.bf16 %v98_v34, %v96_v33  ;;  %p2212_p12 = scmp.lt.s32.totalorder %s2210_s6, %s2206_s5 }
  0x3e   :  { %v1914_v15 = vpack.c.bf16 %v228_v14, %v227_v13  ;;  %v229_v16 = vld [vmem:[#allocation7 + $0x5a0] sm:$0xff]  ;;  %v232_v20 = vld [vmem:[#allocation7 + $0x5d0] sm:$0xff]  ;;  %v100_v41 = vld [vmem:[#allocation7 + $0x48] sm:$0xff] }
  0x3f   :  { %v1918_v18 = vpack.c.bf16 %v230_v17, %v229_v16  ;;  %v231_v19 = vld [vmem:[#allocation7 + $0x5c0] sm:$0xff]  ;;  %v236_v23 = vld [vmem:[#allocation7 + $0x610] sm:$0xff]  ;;  %v102_v42 = vld [vmem:[#allocation7 + $0x58] sm:$0xff]  ;;  %p2213_p13 = por %p2212_p12, %p2211_p11 }
  0x40   :  { %1905 = vmatpush3.bf16.msra.mxu0 %v1902_v5  ;;  %v1922_v21 = vpack.c.bf16 %v232_v20, %v231_v19  ;;  %v235_v22 = vld [vmem:[#allocation7 + $0x600] sm:$0xff]  ;;  %v234_v25 = vld [vmem:[#allocation7 + $0x5f0] sm:$0xff]  ;;  %v2348_v43 = vld [vmem:[#allocation2 + $0x18] sm:$0xff]  ;;  %v1978_v46 = vpack.c.bf16 %v102_v42, %v100_v41 }
  0x41   :  { %1907 = vmatprep.subr.bf16.mxu0 %v1906_v8  ;;  %v233_v24 = vld [vmem:[#allocation7 + $0x5e0] sm:$0xff]  ;;  %v1930_v26 = vpack.c.bf16 %v236_v23, %v235_v22  ;;  %v93_v32 = vld [vmem:[#allocation7 + $0x10] sm:$0xff]  ;;  %v104_v49 = vld [vmem:[#allocation7 + $0x68] sm:$0xff]  ;;  %p2214_p0 = pnand %p2213_p13, %p2207_p10 }
  0x42   :  { %v1926_v27 = vpack.c.bf16 %v234_v25, %v233_v24  ;;  %v91_v31 = vld [vmem:[#allocation7] sm:$0xff]  ;;  %v2344_v37 = vld [vmem:[#allocation2 + $0x10] sm:$0xff]  ;;  %v106_v50 = vld [vmem:[#allocation7 + $0x78] sm:$0xff] }
  0x43   :  { %1931 = vmatprep.subr.bf16.mxu1 %v1930_v26  ;;  %v1972_v36 = vpack.c.bf16 %v93_v32, %v91_v31  ;;  %v95_v39 = vld [vmem:[#allocation7 + $0x20] sm:$0xff]  ;;  %v97_v40 = vld [vmem:[#allocation7 + $0x30] sm:$0xff]  ;;  %v2354_v51 = vld [vmem:[#allocation2 + $0x28] sm:$0xff]  ;;  %v1982_v54 = vpack.c.bf16 %v106_v50, %v104_v49 }
  0x44   :  { %1909 = vmatpush3.bf16.msra.mxu0 %v1906_v8  ;;  %1933 = vmatpush3.bf16.msra.mxu1 %v1930_v26  ;;  %v1976_v44 = vpack.c.bf16 %v97_v40, %v95_v39  ;;  %v2350_v45 = vld [vmem:[#allocation2 + $0x20] sm:$0xff]  ;;  %v101_v48 = vld [vmem:[#allocation7 + $0x50] sm:$0xff]  ;;  %v108_v57 = vld [vmem:[#allocation7 + $0x88] sm:$0xff] }
  0x45   :  { %1911 = vmatprep.subr.bf16.mxu0 %v1910_v12  ;;  %v99_v47 = vld [vmem:[#allocation7 + $0x40] sm:$0xff]  ;;  %v2356_v53 = vld [vmem:[#allocation2 + $0x30] sm:$0xff]  ;;  %v110_v58 = vld [vmem:[#allocation7 + $0x98] sm:$0xff] }
  0x46   :  { %v1980_v52 = vpack.c.bf16 %v101_v48, %v99_v47  ;;  %v103_v55 = vld [vmem:[#allocation7 + $0x60] sm:$0xff]  ;;  %v105_v56 = vld [vmem:[#allocation7 + $0x70] sm:$0xff]  ;;  %v2360_v59 = vld [vmem:[#allocation2 + $0x38] sm:$0xff]  ;;  %v1986_v62 = vpack.c.bf16 %v110_v58, %v108_v57 }
  0x47   :  { %v1984_v60 = vpack.c.bf16 %v105_v56, %v103_v55  ;;  %v2362_v61 = vld [vmem:[#allocation2 + $0x40] sm:$0xff]  ;;  %v109_v0 = vld [vmem:[#allocation7 + $0x90] sm:$0xff]  ;;  %v112_v1 = vld [vmem:[#allocation7 + $0xa8] sm:$0xff] }
  0x48   :  { %1913 = vmatpush3.bf16.msra.mxu0 %v1910_v12  ;;  %v107_v63 = vld [vmem:[#allocation7 + $0x80] sm:$0xff]  ;;  %v114_v2 = vld [vmem:[#allocation7 + $0xb8] sm:$0xff]  ;;  %v68_v3 = vld [vmem:[#allocation2 + $0x48] sm:$0xff] }
  0x49   :  { %1915 = vmatprep.subr.bf16.mxu0 %v1914_v15  ;;  %v1988_v4 = vpack.c.bf16 %v109_v0, %v107_v63  ;;  %v69_v5 = vld [vmem:[#allocation2 + $0x50] sm:$0xff]  ;;  %v1990_v6 = vpack.c.bf16 %v114_v2, %v112_v1  ;;  %v111_v7 = vld [vmem:[#allocation7 + $0xa0] sm:$0xff]  ;;  %v116_v10 = vld [vmem:[#allocation7 + $0xc8] sm:$0xff] }
  0x4a   :  { %v113_v8 = vld [vmem:[#allocation7 + $0xb0] sm:$0xff]  ;;  %v118_v11 = vld [vmem:[#allocation7 + $0xd8] sm:$0xff]  ;;  %v71_v14 = vld [vmem:[#allocation2 + $0x60] sm:$0xff] }
  0x4b   :  { %v70_v12 = vld [vmem:[#allocation2 + $0x58] sm:$0xff]  ;;  %v1992_v13 = vpack.c.bf16 %v113_v8, %v111_v7  ;;  %v115_v16 = vld [vmem:[#allocation7 + $0xc0] sm:$0xff]  ;;  %v117_v17 = vld [vmem:[#allocation7 + $0xd0] sm:$0xff] }
  0x4c   :  { %1917 = vmatpush3.bf16.msra.mxu0 %v1914_v15  ;;  %v1994_v15 = vpack.c.bf16 %v118_v11, %v116_v10  ;;  %v122_v19 = vld [vmem:[#allocation7 + $0xf8] sm:$0xff]  ;;  %v72_v20 = vld [vmem:[#allocation2 + $0x68] sm:$0xff]  ;;  %v73_v22 = vld [vmem:[#allocation2 + $0x70] sm:$0xff] }
  0x4d   :  { %1919 = vmatprep.subr.bf16.mxu0 %v1918_v18  ;;  %v119_v24 = vld [vmem:[#allocation7 + $0xe0] sm:$0xff]  ;;  %v121_v25 = vld [vmem:[#allocation7 + $0xf0] sm:$0xff]  ;;  %v74_v26 = vld [vmem:[#allocation2 + $0x78] sm:$0xff] }
  0x4e   :  { %v238_v29 = vld [vmem:[#allocation7 + $0x630] sm:$0xff]  ;;  %v124_v31 = vld [vmem:[#allocation7 + $0x108] sm:$0xff]  ;;  %v126_v32 = vld [vmem:[#allocation7 + $0x118] sm:$0xff] }
  0x4f   :  { %v123_v33 = vld [vmem:[#allocation7 + $0x100] sm:$0xff]  ;;  %v2002_v34 = vpack.c.bf16 %v126_v32, %v124_v31  ;;  %v129_v41 = vld [vmem:[#allocation7 + $0x130] sm:$0xff]  ;;  %v136_v48 = vld [vmem:[#allocation7 + $0x168] sm:$0xff] }
  0x50   :  { %1921 = vmatpush3.bf16.msra.mxu0 %v1918_v18  ;;  %v120_v18 = vld [vmem:[#allocation7 + $0xe8] sm:$0xff]  ;;  %v127_v40 = vld [vmem:[#allocation7 + $0x120] sm:$0xff]  ;;  %v133_v47 = vld [vmem:[#allocation7 + $0x150] sm:$0xff] }
  0x51   :  { %1923 = vmatprep.subr.bf16.mxu0 %v1922_v21  ;;  %v1998_v23 = vpack.c.bf16 %v122_v19, %v120_v18  ;;  %v2008_v42 = vpack.c.bf16 %v129_v41, %v127_v40  ;;  %v138_v49 = vld [vmem:[#allocation7 + $0x178] sm:$0xff]  ;;  %v139_v58 = vld [vmem:[#allocation7 + $0x180] sm:$0xff]  ;;  %v145_v1 = vld [vmem:[#allocation7 + $0x1b0] sm:$0xff] }
  0x52   :  { %v142_v55 = vld [vmem:[#allocation7 + $0x198] sm:$0xff]  ;;  %v143_v0 = vld [vmem:[#allocation7 + $0x1a0] sm:$0xff]  ;;  %v148_v2 = vld [vmem:[#allocation7 + $0x1c8] sm:$0xff] }
  0x53   :  { %v149_v7 = vld [vmem:[#allocation7 + $0x1d0] sm:$0xff]  ;;  %v152_v8 = vld [vmem:[#allocation7 + $0x1e8] sm:$0xff]  ;;  %v154_v10 = vld [vmem:[#allocation7 + $0x1f8] sm:$0xff] }
  0x54   :  { %1925 = vmatpush3.bf16.msra.mxu0 %v1922_v21  ;;  %v1996_v21 = vpack.c.bf16 %v117_v17, %v115_v16  ;;  %v158_v16 = vld [vmem:[#allocation7 + $0x218] sm:$0xff]  ;;  %v155_v19 = vld [vmem:[#allocation7 + $0x200] sm:$0xff]  ;;  %v165_v32 = vld [vmem:[#allocation7 + $0x250] sm:$0xff] }
  0x55   :  { %1927 = vmatprep.subr.bf16.mxu0 %v1926_v27  ;;  %v163_v31 = vld [vmem:[#allocation7 + $0x240] sm:$0xff]  ;;  %v174_v40 = vld [vmem:[#allocation7 + $0x298] sm:$0xff]  ;;  %vm2479_vm2 = vmpackc.low %vm411_vm0, %vm411_vm0 }
  0x58   :  { %1929 = vmatpush3.bf16.msra.mxu0 %v1926_v27  ;;  %v2000_v27 = vpack.c.bf16 %v121_v25, %v119_v24  ;;  %v159_v25 = vld [vmem:[#allocation7 + $0x220] sm:$0xff] }
  0x59   :  { %1971 = vmatprep.subr.bf16.mxu0 %v1970_v30 }
  0x5b   :  { %1773 = vmatmul.mubr.f32.vlgmr.msra.gmra.mrb[0].mxu0 %v2342_v35 }
  0x5c   :  { %1775 = vmatprep.mubr.f32.mxu0 %v2344_v37  ;;  %1973 = vmatpush1.bf16.msra.mxu0 %v1972_v36  ;;  %v128_v36 = vld [vmem:[#allocation7 + $0x128] sm:$0xff] }
  0x5d   :  { %1975 = vmatprep.subr.bf16.mxu0 %v1974_v38 }
  0x5f   :  { %1776 = vmatmul.mubr.f32.gmra.mrb[2].mxu0 %v2348_v43 }
  0x60   :  { %1778 = vmatprep.mubr.f32.mxu0 %v2350_v45  ;;  %1977 = vmatpush1.bf16.msra.mxu0 %v1976_v44  ;;  %v134_v44 = vld [vmem:[#allocation7 + $0x158] sm:$0xff] }
  0x61   :  { %1979 = vmatprep.subr.bf16.mxu0 %v1978_v46  ;;  %v131_v46 = vld [vmem:[#allocation7 + $0x140] sm:$0xff] }
  0x62   :  { %v2012_v50 = vpack.c.bf16 %v133_v47, %v131_v46  ;;  %v178_v46 = vld [vmem:[#allocation7 + $0x2b8] sm:$0xff] }
  0x63   :  { %1779 = vmatmul.mubr.f32.gmra.mrb[4].mxu0 %v2354_v51 }
  0x64   :  { %1781 = vmatprep.mubr.f32.mxu0 %v2356_v53  ;;  %1981 = vmatpush1.bf16.msra.mxu0 %v1980_v52  ;;  %v135_v52 = vld [vmem:[#allocation7 + $0x160] sm:$0xff] }
  0x65   :  { %1983 = vmatprep.subr.bf16.mxu0 %v1982_v54  ;;  %v140_v54 = vld [vmem:[#allocation7 + $0x188] sm:$0xff] }
  0x66   :  { %v2018_v57 = vpack.c.bf16 %v142_v55, %v140_v54  ;;  %v179_v55 = vld [vmem:[#allocation7 + $0x2c0] sm:$0xff] }
  0x67   :  { %1782 = vmatmul.mubr.f32.gmra.mrb[6].mxu0 %v2360_v59 }
  0x68   :  { %1784 = vmatprep.mubr.f32.mxu0 %v2362_v61  ;;  %1985 = vmatpush1.bf16.msra.mxu0 %v1984_v60  ;;  %v144_v60 = vld [vmem:[#allocation7 + $0x1a8] sm:$0xff] }
  0x69   :  { %1987 = vmatprep.subr.bf16.mxu0 %v1986_v62 }
  0x6b   :  { %1785 = vmatmul.mubr.f32.gmra.mrb[8].mxu0 %v68_v3 }
  0x6c   :  { %1787 = vmatprep.mubr.f32.mxu0 %v69_v5  ;;  %1989 = vmatpush1.bf16.msra.mxu0 %v1988_v4  ;;  %v2024_v4 = vpack.c.bf16 %v145_v1, %v143_v0  ;;  %v2391_v0 = vld [vmem:[#allocation7 + $0x644] ss:$0 sm:$0xff] }
  0x6d   :  { %1991 = vmatprep.subr.bf16.mxu0 %v1990_v6  ;;  %v147_v6 = vld [vmem:[#allocation7 + $0x1c0] sm:$0xff] }
  0x6e   :  { %v2028_v11 = vpack.c.bf16 %v149_v7, %v147_v6 }
  0x6f   :  { %1788 = vmatmul.mubr.f32.gmra.mrb[10].mxu0 %v70_v12 }
  0x70   :  { %1790 = vmatprep.mubr.f32.mxu0 %v71_v14  ;;  %1993 = vmatpush1.bf16.msra.mxu0 %v1992_v13  ;;  %v151_v13 = vld [vmem:[#allocation7 + $0x1e0] sm:$0xff] }
  0x71   :  { %1995 = vmatprep.subr.bf16.mxu0 %v1994_v15  ;;  %v156_v15 = vld [vmem:[#allocation7 + $0x208] sm:$0xff] }
  0x72   :  { %v2034_v18 = vpack.c.bf16 %v158_v16, %v156_v15 }
  0x73   :  { %1791 = vmatmul.mubr.f32.gmra.mrb[12].mxu0 %v72_v20 }
  0x74   :  { %1793 = vmatprep.mubr.f32.mxu0 %v73_v22  ;;  %1997 = vmatpush1.bf16.msra.mxu0 %v1996_v21  ;;  %v160_v21 = vld [vmem:[#allocation7 + $0x228] sm:$0xff] }
  0x75   :  { %1999 = vmatprep.subr.bf16.mxu0 %v1998_v23 }
  0x77   :  { %1794 = vmatmul.mubr.f32.gmra.mrb[14].mxu0 %v74_v26 }
  0x78   :  { %2001 = vmatpush1.bf16.msra.mxu0 %v2000_v27  ;;  %830 = vmatprep.mubr.f32.mxu0 %v2265_v28  ;;  %v164_v27 = vld [vmem:[#allocation7 + $0x248] sm:$0xff] }
  0x79   :  { %2003 = vmatprep.subr.bf16.mxu0 %v2002_v34  ;;  %v170_v34 = vld [vmem:[#allocation7 + $0x278] sm:$0xff] }
  0x7b   :  { %831 = vmatmul.mubr.f32.vlgmr.msra.gmra.mrb[16].mxu0 %v2339_v9  ;;  %v237_v9 = vld [vmem:[#allocation7 + $0x620] sm:$0xff] }
  0x7c   :  { %836 = vmatprep.mubr.f32.mxu0 %v2265_v28  ;;  %v1934_v30 = vpack.c.bf16 %v238_v29, %v237_v9  ;;  %v166_v9 = vld [vmem:[#allocation7 + $0x258] sm:$0xff] }
  0x7e   :  { %1935 = vmatprep.subr.bf16.mxu1 %v1934_v30 }
  0x7f   :  { %837 = vmatmul.mubr.f32.gmra.mrb[18].mxu0 %v2342_v35  ;;  %1937 = vmatpush3.bf16.msra.mxu1 %v1934_v30  ;;  %v125_v35 = vld [vmem:[#allocation7 + $0x110] sm:$0xff]  ;;  %v2042_v30 = vpack.c.bf16 %v166_v9, %v164_v27 }
  0x80   :  { %842 = vmatprep.mubr.f32.mxu0 %v2265_v28  ;;  %v2004_v38 = vpack.c.bf16 %v125_v35, %v123_v33  ;;  %v168_v33 = vld [vmem:[#allocation7 + $0x268] sm:$0xff]  ;;  %v2044_v35 = vpack.c.bf16 %v165_v32, %v163_v31 }
  0x82   :  { %2005 = vmatpush1.bf16.msra.mxu0 %v2004_v38  ;;  %v169_v38 = vld [vmem:[#allocation7 + $0x270] sm:$0xff] }
  0x83   :  { %843 = vmatmul.mubr.f32.gmra.mrb[20].mxu0 %v2344_v37  ;;  %v130_v37 = vld [vmem:[#allocation7 + $0x138] sm:$0xff] }
  0x84   :  { %848 = vmatprep.mubr.f32.mxu0 %v2265_v28  ;;  %v2006_v39 = vpack.c.bf16 %v130_v37, %v128_v36  ;;  %v2046_v36 = vpack.c.bf16 %v170_v34, %v168_v33  ;;  %v167_v37 = vld [vmem:[#allocation7 + $0x260] sm:$0xff] }
  0x85   :  { %v2048_v41 = vpack.c.bf16 %v169_v38, %v167_v37 }
  0x86   :  { %2007 = vmatprep.subr.bf16.mxu0 %v2006_v39  ;;  %v172_v39 = vld [vmem:[#allocation7 + $0x288] sm:$0xff] }
  0x87   :  { %849 = vmatmul.mubr.f32.gmra.mrb[22].mxu0 %v2348_v43  ;;  %v132_v43 = vld [vmem:[#allocation7 + $0x148] sm:$0xff] }
  0x88   :  { %854 = vmatprep.mubr.f32.mxu0 %v2265_v28  ;;  %2009 = vmatpush1.bf16.msra.mxu0 %v2008_v42  ;;  %v2050_v42 = vpack.c.bf16 %v174_v40, %v172_v39 }
  0x8b   :  { %855 = vmatmul.mubr.f32.gmra.mrb[24].mxu0 %v2350_v45  ;;  %v2010_v45 = vpack.c.bf16 %v134_v44, %v132_v43  ;;  %v171_v43 = vld [vmem:[#allocation7 + $0x280] sm:$0xff]  ;;  %v173_v44 = vld [vmem:[#allocation7 + $0x290] sm:$0xff] }
  0x8c   :  { %860 = vmatprep.mubr.f32.mxu0 %v2265_v28  ;;  %v2052_v47 = vpack.c.bf16 %v173_v44, %v171_v43 }
  0x8d   :  { %2011 = vmatprep.subr.bf16.mxu0 %v2010_v45  ;;  %v176_v45 = vld [vmem:[#allocation7 + $0x2a8] sm:$0xff] }
  0x8e   :  { %2013 = vmatpush1.bf16.msra.mxu0 %v2012_v50  ;;  %v177_v50 = vld [vmem:[#allocation7 + $0x2b0] sm:$0xff] }
  0x8f   :  { %861 = vmatmul.mubr.f32.gmra.mrb[26].mxu0 %v2354_v51  ;;  %v2014_v51 = vpack.c.bf16 %v138_v49, %v136_v48  ;;  %v2054_v48 = vpack.c.bf16 %v178_v46, %v176_v45  ;;  %v175_v49 = vld [vmem:[#allocation7 + $0x2a0] sm:$0xff] }
  0x90   :  { %866 = vmatprep.mubr.f32.mxu0 %v2265_v28  ;;  %v240_v45 = vld [vmem:[#allocation7 + $0x640] ss:$8 sm:$0x3] }
  0x91   :  { %2015 = vmatprep.subr.bf16.mxu0 %v2014_v51  ;;  %v180_v51 = vld [vmem:[#allocation7 + $0x2c8] sm:$0xff] }
  0x93   :  { %867 = vmatmul.mubr.f32.gmra.mrb[28].mxu0 %v2356_v53  ;;  %v137_v53 = vld [vmem:[#allocation7 + $0x170] sm:$0xff] }
  0x94   :  { %872 = vmatprep.mubr.f32.mxu0 %v2265_v28  ;;  %v2016_v56 = vpack.c.bf16 %v137_v53, %v135_v52  ;;  %v182_v52 = vld [vmem:[#allocation7 + $0x2d8] sm:$0xff]  ;;  %v2056_v53 = vpack.c.bf16 %v177_v50, %v175_v49 }
  0x95   :  { %v2058_v54 = vpack.c.bf16 %v182_v52, %v180_v51 }
  0x96   :  { %2017 = vmatpush1.bf16.msra.mxu0 %v2016_v56  ;;  %v181_v56 = vld [vmem:[#allocation7 + $0x2d0] sm:$0xff] }
  0x97   :  { %873 = vmatmul.mubr.f32.gmra.mrb[30].mxu0 %v2360_v59  ;;  %v141_v59 = vld [vmem:[#allocation7 + $0x190] sm:$0xff]  ;;  %2019 = vmatprep.subr.bf16.mxu0 %v2018_v57  ;;  %v184_v57 = vld [vmem:[#allocation7 + $0x2e8] sm:$0xff] }
  0x98   :  { %878 = vmatprep.mubr.f32.mxu0 %v2265_v28  ;;  %v2020_v62 = vpack.c.bf16 %v141_v59, %v139_v58  ;;  %v186_v58 = vld [vmem:[#allocation7 + $0x2f8] sm:$0xff]  ;;  %v2060_v59 = vpack.c.bf16 %v181_v56, %v179_v55 }
  0x9a   :  { %2021 = vmatpush1.bf16.msra.mxu0 %v2020_v62  ;;  %v185_v62 = vld [vmem:[#allocation7 + $0x2f0] sm:$0xff] }
  0x9b   :  { %879 = vmatmul.mubr.f32.gmra.mrb[32].mxu0 %v2362_v61  ;;  %v146_v61 = vld [vmem:[#allocation7 + $0x1b8] sm:$0xff] }
  0x9c   :  { %884 = vmatprep.mubr.f32.mxu0 %v2265_v28  ;;  %v2022_v63 = vpack.c.bf16 %v146_v61, %v144_v60  ;;  %v2062_v60 = vpack.c.bf16 %v186_v58, %v184_v57  ;;  %v183_v61 = vld [vmem:[#allocation7 + $0x2e0] sm:$0xff] }
  0x9e   :  { %2023 = vmatprep.subr.bf16.mxu0 %v2022_v63  ;;  %v2064_v63 = vpack.c.bf16 %v185_v62, %v183_v61 }
  0x9f   :  { %885 = vmatmul.mubr.f32.gmra.mrb[34].mxu0 %v68_v3  ;;  %v150_v3 = vld [vmem:[#allocation7 + $0x1d8] sm:$0xff] }
  0xa0   :  { %890 = vmatprep.mubr.f32.mxu0 %v2265_v28  ;;  %2025 = vmatpush1.bf16.msra.mxu0 %v2024_v4 }
  0xa3   :  { %891 = vmatmul.mubr.f32.gmra.mrb[36].mxu0 %v69_v5  ;;  %v2026_v5 = vpack.c.bf16 %v150_v3, %v148_v2 }
  0xa4   :  { %896 = vmatprep.mubr.f32.mxu0 %v2265_v28 }
  0xa5   :  { %2027 = vmatprep.subr.bf16.mxu0 %v2026_v5 }
  0xa6   :  { %2029 = vmatpush1.bf16.msra.mxu0 %v2028_v11 }
  0xa7   :  { %897 = vmatmul.mubr.f32.gmra.mrb[38].mxu0 %v70_v12  ;;  %v2030_v12 = vpack.c.bf16 %v154_v10, %v152_v8 }
  0xa8   :  { %902 = vmatprep.mubr.f32.mxu0 %v2265_v28 }
  0xa9   :  { %2031 = vmatprep.subr.bf16.mxu0 %v2030_v12 }
  0xab   :  { %903 = vmatmul.mubr.f32.gmra.mrb[40].mxu0 %v71_v14  ;;  %v153_v14 = vld [vmem:[#allocation7 + $0x1f0] sm:$0xff] }
  0xac   :  { %908 = vmatprep.mubr.f32.mxu0 %v2265_v28  ;;  %v2032_v17 = vpack.c.bf16 %v153_v14, %v151_v13 }
  0xae   :  { %2033 = vmatpush1.bf16.msra.mxu0 %v2032_v17 }
  0xaf   :  { %909 = vmatmul.mubr.f32.gmra.mrb[42].mxu0 %v72_v20  ;;  %v157_v20 = vld [vmem:[#allocation7 + $0x210] sm:$0xff]  ;;  %2035 = vmatprep.subr.bf16.mxu0 %v2034_v18 }
  0xb0   :  { %914 = vmatprep.mubr.f32.mxu0 %v2265_v28  ;;  %v2036_v23 = vpack.c.bf16 %v157_v20, %v155_v19 }
  0xb2   :  { %2037 = vmatpush1.bf16.msra.mxu0 %v2036_v23 }
  0xb3   :  { %915 = vmatmul.mubr.f32.gmra.mrb[44].mxu0 %v73_v22  ;;  %v162_v22 = vld [vmem:[#allocation7 + $0x238] sm:$0xff] }
  0xb4   :  { %920 = vmatprep.mubr.f32.mxu0 %v2265_v28  ;;  %v2038_v24 = vpack.c.bf16 %v162_v22, %v160_v21 }
  0xb6   :  { %2039 = vmatprep.subr.bf16.mxu0 %v2038_v24 }
  0xb7   :  { %921 = vmatmul.mubr.f32.gmra.mrb[46].mxu0 %v74_v26  ;;  %v161_v26 = vld [vmem:[#allocation7 + $0x230] sm:$0xff] }
  0xb8   :  { %v2040_v29 = vpack.c.bf16 %v161_v26, %v159_v25 }
  0xba   :  { %2041 = vmatpush1.bf16.msra.mxu0 %v2040_v29  ;;  %v756_v29 = vlaneseq }
  0xbb   :  { %2043 = vmatprep.subr.bf16.mxu0 %v2042_v30 }
  0xbe   :  { %2045 = vmatpush1.bf16.msra.mxu0 %v2044_v35 }
  0xbf   :  { %2047 = vmatprep.subr.bf16.mxu0 %v2046_v36  ;;  %v2412_v36 = vshrl.u32 %v756_v29, 7 }
  0xc1   :  { %v758_v43 = vsub.s32 0, %v2412_v36  ;;  %v762_v46 = vsub.s32 1, %v2412_v36 }
  0xc2   :  { %2049 = vmatpush1.bf16.msra.mxu0 %v2048_v41 }
  0xc3   :  { %2051 = vmatprep.subr.bf16.mxu0 %v2050_v42  ;;  %v2426_v52 = vrot.slane %v240_v45, %v758_v43 }
  0xc6   :  { %2053 = vmatpush1.bf16.msra.mxu0 %v2052_v47 }
  0xc7   :  { %2055 = vmatprep.subr.bf16.mxu0 %v2054_v48 }
  0xca   :  { %2057 = vmatpush1.bf16.msra.mxu0 %v2056_v53 }
  0xcb   :  { %2059 = vmatprep.subr.bf16.mxu0 %v2058_v54  ;;  %v2432_v54 = vrot.slane %v240_v45, %v762_v46 }
  0xce   :  { %2061 = vmatpush1.bf16.msra.mxu0 %v2060_v59 }
  0xcf   :  { %2063 = vmatprep.subr.bf16.mxu0 %v2062_v60 }
  0xd2   :  { %2065 = vmatpush1.bf16.msra.mxu0 %v2064_v63 }
 0x12e   :  { %v1774_v1 = vpop.f32.mrb[0].mxu0 }
 0x12f   :  { %v322_v2 = vadd.f32 %v1774_v1, %v2391_v0  ;;  %v316_v3 = vpop.f32.mrb[1].mxu0 }
 0x130   :  { %v317_v4 = vadd.f32 %v316_v3, %v2391_v0 }
 0x131   :  { %v396_v7 = vmax.f32 %v322_v2, 0.0 }
 0x132   :  { %v395_v5 = vmax.f32 %v317_v4, 0.0  ;;  %v1777_v6 = vpop.f32.mrb[2].mxu0 }
 0x133   :  { %v332_v8 = vadd.f32 %v1777_v6, %v2391_v0  ;;  %v326_v10 = vpop.f32.mrb[3].mxu0 }
 0x134   :  { %v327_v11 = vadd.f32 %v326_v10, %v2391_v0  ;;  %1804 = vmatprep.mubr.msk.f32.mxu1 %vm411_vm0, %v395_v5 }
 0x135   :  { %v398_v12 = vmax.f32 %v332_v8, 0.0  ;;  %1805 = vmatmul.mubr.msk.f32.vlgmr.msra.gmra.mrb[0].mxu1 %vm411_vm0, %v396_v7 }
 0x136   :  { %v397_v13 = vmax.f32 %v327_v11, 0.0  ;;  %v1780_v14 = vpop.f32.mrb[4].mxu0 }
 0x137   :  { %v342_v15 = vadd.f32 %v1780_v14, %v2391_v0  ;;  %v336_v16 = vpop.f32.mrb[5].mxu0 }
 0x138   :  { %1807 = vmatprep.mubr.msk.f32.mxu1 %vm411_vm0, %v397_v13  ;;  %v337_v17 = vadd.f32 %v336_v16, %v2391_v0 }
 0x139   :  { %1808 = vmatmul.mubr.msk.f32.gmra.mrb[2].mxu1 %vm411_vm0, %v398_v12  ;;  %v400_v18 = vmax.f32 %v342_v15, 0.0 }
 0x13a   :  { %v399_v19 = vmax.f32 %v337_v17, 0.0  ;;  %v1783_v20 = vpop.f32.mrb[6].mxu0 }
 0x13b   :  { %v352_v21 = vadd.f32 %v1783_v20, %v2391_v0  ;;  %v346_v22 = vpop.f32.mrb[7].mxu0 }
 0x13c   :  { %1810 = vmatprep.mubr.msk.f32.mxu1 %vm411_vm0, %v399_v19  ;;  %v347_v23 = vadd.f32 %v346_v22, %v2391_v0 }
 0x13d   :  { %1811 = vmatmul.mubr.msk.f32.gmra.mrb[4].mxu1 %vm411_vm0, %v400_v18  ;;  %v402_v24 = vmax.f32 %v352_v21, 0.0 }
 0x13e   :  { %v401_v25 = vmax.f32 %v347_v23, 0.0  ;;  %v1786_v26 = vpop.f32.mrb[8].mxu0 }
 0x13f   :  { %v362_v27 = vadd.f32 %v1786_v26, %v2391_v0  ;;  %v356_v9 = vpop.f32.mrb[9].mxu0 }
 0x140   :  { %1813 = vmatprep.mubr.msk.f32.mxu1 %vm411_vm0, %v401_v25  ;;  %v357_v30 = vadd.f32 %v356_v9, %v2391_v0 }
 0x141   :  { %1814 = vmatmul.mubr.msk.f32.gmra.mrb[6].mxu1 %vm411_vm0, %v402_v24  ;;  %v404_v31 = vmax.f32 %v362_v27, 0.0 }
 0x142   :  { %v403_v32 = vmax.f32 %v357_v30, 0.0  ;;  %v1789_v33 = vpop.f32.mrb[10].mxu0 }
 0x143   :  { %v372_v34 = vadd.f32 %v1789_v33, %v2391_v0  ;;  %v366_v35 = vpop.f32.mrb[11].mxu0 }
 0x144   :  { %1816 = vmatprep.mubr.msk.f32.mxu1 %vm411_vm0, %v403_v32  ;;  %v367_v37 = vadd.f32 %v366_v35, %v2391_v0 }
 0x145   :  { %1817 = vmatmul.mubr.msk.f32.gmra.mrb[8].mxu1 %vm411_vm0, %v404_v31  ;;  %v406_v38 = vmax.f32 %v372_v34, 0.0 }
 0x146   :  { %v405_v39 = vmax.f32 %v367_v37, 0.0  ;;  %v1792_v40 = vpop.f32.mrb[12].mxu0 }
 0x147   :  { %v382_v41 = vadd.f32 %v1792_v40, %v2391_v0  ;;  %v376_v42 = vpop.f32.mrb[13].mxu0 }
 0x148   :  { %1819 = vmatprep.mubr.msk.f32.mxu1 %vm411_vm0, %v405_v39  ;;  %v377_v44 = vadd.f32 %v376_v42, %v2391_v0 }
 0x149   :  { %1820 = vmatmul.mubr.msk.f32.gmra.mrb[10].mxu1 %vm411_vm0, %v406_v38  ;;  %v408_v47 = vmax.f32 %v382_v41, 0.0 }
 0x14a   :  { %v407_v48 = vmax.f32 %v377_v44, 0.0  ;;  %v1795_v49 = vpop.f32.mrb[14].mxu0 }
 0x14b   :  { %v392_v50 = vadd.f32 %v1795_v49, %v2391_v0  ;;  %v386_v51 = vpop.f32.mrb[15].mxu0 }
 0x14c   :  { %1822 = vmatprep.mubr.msk.f32.mxu1 %vm411_vm0, %v407_v48  ;;  %v387_v53 = vadd.f32 %v386_v51, %v2391_v0 }
 0x14d   :  { %1823 = vmatmul.mubr.msk.f32.gmra.mrb[12].mxu1 %vm411_vm0, %v408_v47  ;;  %v410_v55 = vmax.f32 %v392_v50, 0.0 }
 0x14e   :  { %v409_v56 = vmax.f32 %v387_v53, 0.0  ;;  %v832_v57 = vpop.f32.mrb[16].mxu0 }
 0x14f   :  { %v833_v58 = vadd.f32 %v832_v57, %v2426_v52  ;;  %v834_v59 = vpop.f32.mrb[17].mxu0 }
 0x150   :  { %1825 = vmatprep.mubr.msk.f32.mxu1 %vm411_vm0, %v409_v56  ;;  %v835_v60 = vadd.f32 %v834_v59, %v2432_v54 }
 0x151   :  { %1826 = vmatmul.mubr.msk.f32.gmra.mrb[14].mxu1 %vm411_vm0, %v410_v55  ;;  %v927_v61 = vmax.f32 %v833_v58, 0.0 }
 0x152   :  { %v928_v62 = vmax.f32 %v835_v60, 0.0  ;;  %v838_v63 = vpop.f32.mrb[18].mxu0  ;;  %1860 = vmatprep.mubr.msk.f32.mxu1 %vm2267_vm1, %v2265_v28 }
 0x153   :  { %v839_v0 = vadd.f32 %v838_v63, %v2426_v52  ;;  %v840_v1 = vpop.f32.mrb[19].mxu0 }
 0x154   :  { %v841_v2 = vadd.f32 %v840_v1, %v2432_v54  ;;  %1034 = vmatprep.mubr.f32.mxu0 %v928_v62 }
 0x155   :  { %v929_v3 = vmax.f32 %v839_v0, 0.0  ;;  %1035 = vmatmul.mubr.f32.vlgmr.msra.gmra.mrb[48].mxu0 %v927_v61 }
 0x156   :  { %v930_v4 = vmax.f32 %v841_v2, 0.0  ;;  %v844_v5 = vpop.f32.mrb[20].mxu0 }
 0x157   :  { %v845_v6 = vadd.f32 %v844_v5, %v2426_v52  ;;  %v846_v7 = vpop.f32.mrb[21].mxu0 }
 0x158   :  { %v847_v8 = vadd.f32 %v846_v7, %v2432_v54  ;;  %1040 = vmatprep.mubr.f32.mxu0 %v930_v4 }
 0x159   :  { %v931_v10 = vmax.f32 %v845_v6, 0.0  ;;  %1041 = vmatmul.mubr.f32.gmra.mrb[50].mxu0 %v929_v3 }
 0x15a   :  { %v932_v11 = vmax.f32 %v847_v8, 0.0  ;;  %v850_v12 = vpop.f32.mrb[22].mxu0 }
 0x15b   :  { %v851_v13 = vadd.f32 %v850_v12, %v2426_v52  ;;  %v852_v14 = vpop.f32.mrb[23].mxu0 }
 0x15c   :  { %v853_v15 = vadd.f32 %v852_v14, %v2432_v54  ;;  %1046 = vmatprep.mubr.f32.mxu0 %v932_v11 }
 0x15d   :  { %v933_v16 = vmax.f32 %v851_v13, 0.0  ;;  %1047 = vmatmul.mubr.f32.gmra.mrb[52].mxu0 %v931_v10 }
 0x15e   :  { %v934_v17 = vmax.f32 %v853_v15, 0.0  ;;  %v856_v18 = vpop.f32.mrb[24].mxu0 }
 0x15f   :  { %v857_v19 = vadd.f32 %v856_v18, %v2426_v52  ;;  %v858_v20 = vpop.f32.mrb[25].mxu0 }
 0x160   :  { %v859_v21 = vadd.f32 %v858_v20, %v2432_v54  ;;  %1052 = vmatprep.mubr.f32.mxu0 %v934_v17 }
 0x161   :  { %v935_v22 = vmax.f32 %v857_v19, 0.0  ;;  %1053 = vmatmul.mubr.f32.gmra.mrb[54].mxu0 %v933_v16 }
 0x162   :  { %v936_v23 = vmax.f32 %v859_v21, 0.0  ;;  %v862_v24 = vpop.f32.mrb[26].mxu0 }
 0x163   :  { %v863_v25 = vadd.f32 %v862_v24, %v2426_v52  ;;  %v864_v26 = vpop.f32.mrb[27].mxu0 }
 0x164   :  { %v865_v27 = vadd.f32 %v864_v26, %v2432_v54  ;;  %1058 = vmatprep.mubr.f32.mxu0 %v936_v23 }
 0x165   :  { %v937_v9 = vmax.f32 %v863_v25, 0.0  ;;  %1059 = vmatmul.mubr.f32.gmra.mrb[56].mxu0 %v935_v22 }
 0x166   :  { %v938_v29 = vmax.f32 %v865_v27, 0.0  ;;  %v868_v30 = vpop.f32.mrb[28].mxu0 }
 0x167   :  { %v869_v31 = vadd.f32 %v868_v30, %v2426_v52  ;;  %v870_v32 = vpop.f32.mrb[29].mxu0 }
 0x168   :  { %v871_v33 = vadd.f32 %v870_v32, %v2432_v54  ;;  %1064 = vmatprep.mubr.f32.mxu0 %v938_v29  ;;  %v2266_v32 = vmov 0.0|0.0  }
 0x169   :  { %v939_v34 = vmax.f32 %v869_v31, 0.0  ;;  %1065 = vmatmul.mubr.f32.gmra.mrb[58].mxu0 %v937_v9  ;;  %1938 = vmatprep.subr.bf16.mxu1 %v2266_v32 }
 0x16a   :  { %v940_v35 = vmax.f32 %v871_v33, 0.0  ;;  %v874_v37 = vpop.f32.mrb[30].mxu0  ;;  %v2472_v33 = vld [vmem:[#allocation7 + $0x645] ss:$0 sm:$0xff] }
 0x16b   :  { %v875_v38 = vadd.f32 %v874_v37, %v2426_v52  ;;  %v876_v39 = vpop.f32.mrb[31].mxu0 }
 0x16c   :  { %v877_v40 = vadd.f32 %v876_v39, %v2432_v54  ;;  %1070 = vmatprep.mubr.f32.mxu0 %v940_v35 }
 0x16d   :  { %v941_v41 = vmax.f32 %v875_v38, 0.0  ;;  %1071 = vmatmul.mubr.f32.gmra.mrb[60].mxu0 %v939_v34 }
 0x16e   :  { %v942_v42 = vmax.f32 %v877_v40, 0.0  ;;  %v880_v44 = vpop.f32.mrb[32].mxu0 }
 0x16f   :  { %v881_v45 = vadd.f32 %v880_v44, %v2426_v52  ;;  %v882_v47 = vpop.f32.mrb[33].mxu0 }
 0x170   :  { %v883_v48 = vadd.f32 %v882_v47, %v2432_v54  ;;  %1076 = vmatprep.mubr.f32.mxu0 %v942_v42  ;;  %v190_v42 = vld [vmem:[#allocation7 + $0x330] sm:$0xff] }
 0x171   :  { %v943_v49 = vmax.f32 %v881_v45, 0.0  ;;  %1077 = vmatmul.mubr.f32.gmra.mrb[62].mxu0 %v941_v41 }
 0x172   :  { %v944_v50 = vmax.f32 %v883_v48, 0.0  ;;  %v886_v51 = vpop.f32.mrb[34].mxu0 }
 0x173   :  { %v887_v53 = vadd.f32 %v886_v51, %v2426_v52  ;;  %v888_v55 = vpop.f32.mrb[35].mxu0 }
 0x174   :  { %v889_v56 = vadd.f32 %v888_v55, %v2432_v54  ;;  %1082 = vmatprep.mubr.f32.mxu0 %v944_v50 }
 0x175   :  { %v945_v57 = vmax.f32 %v887_v53, 0.0  ;;  %1083 = vmatmul.mubr.f32.gmra.mrb[64].mxu0 %v943_v49 }
 0x176   :  { %v946_v58 = vmax.f32 %v889_v56, 0.0  ;;  %v892_v59 = vpop.f32.mrb[36].mxu0 }
 0x177   :  { %v893_v60 = vadd.f32 %v892_v59, %v2426_v52  ;;  %v894_v61 = vpop.f32.mrb[37].mxu0 }
 0x178   :  { %v895_v62 = vadd.f32 %v894_v61, %v2432_v54  ;;  %1088 = vmatprep.mubr.f32.mxu0 %v946_v58 }
 0x179   :  { %v947_v63 = vmax.f32 %v893_v60, 0.0  ;;  %1089 = vmatmul.mubr.f32.gmra.mrb[66].mxu0 %v945_v57 }
 0x17a   :  { %v948_v0 = vmax.f32 %v895_v62, 0.0  ;;  %v898_v1 = vpop.f32.mrb[38].mxu0 }
 0x17b   :  { %v899_v2 = vadd.f32 %v898_v1, %v2426_v52  ;;  %v900_v3 = vpop.f32.mrb[39].mxu0 }
 0x17c   :  { %v901_v4 = vadd.f32 %v900_v3, %v2432_v54  ;;  %1094 = vmatprep.mubr.f32.mxu0 %v948_v0 }
 0x17d   :  { %v949_v5 = vmax.f32 %v899_v2, 0.0  ;;  %1095 = vmatmul.mubr.f32.gmra.mrb[68].mxu0 %v947_v63 }
 0x17e   :  { %v950_v6 = vmax.f32 %v901_v4, 0.0  ;;  %v904_v7 = vpop.f32.mrb[40].mxu0 }
 0x17f   :  { %v905_v8 = vadd.f32 %v904_v7, %v2426_v52  ;;  %v906_v10 = vpop.f32.mrb[41].mxu0 }
 0x180   :  { %v907_v11 = vadd.f32 %v906_v10, %v2432_v54  ;;  %1100 = vmatprep.mubr.f32.mxu0 %v950_v6 }
 0x181   :  { %v951_v12 = vmax.f32 %v905_v8, 0.0  ;;  %1101 = vmatmul.mubr.f32.gmra.mrb[70].mxu0 %v949_v5 }
 0x182   :  { %v952_v13 = vmax.f32 %v907_v11, 0.0  ;;  %v910_v14 = vpop.f32.mrb[42].mxu0 }
 0x183   :  { %v911_v15 = vadd.f32 %v910_v14, %v2426_v52  ;;  %v912_v16 = vpop.f32.mrb[43].mxu0 }
 0x184   :  { %v913_v17 = vadd.f32 %v912_v16, %v2432_v54  ;;  %1106 = vmatprep.mubr.f32.mxu0 %v952_v13 }
 0x185   :  { %v953_v18 = vmax.f32 %v911_v15, 0.0  ;;  %1107 = vmatmul.mubr.f32.gmra.mrb[72].mxu0 %v951_v12 }
 0x186   :  { %v954_v19 = vmax.f32 %v913_v17, 0.0  ;;  %v916_v20 = vpop.f32.mrb[44].mxu0  ;;  %v248_v17 = vld [vmem:[#allocation7 + $0x647] ss:$0 sm:$0xff] }
 0x187   :  { %v917_v21 = vadd.f32 %v916_v20, %v2426_v52  ;;  %v918_v22 = vpop.f32.mrb[45].mxu0  ;;  %v2268_v20 = vmov 0  }
 0x188   :  { %v919_v23 = vadd.f32 %v918_v22, %v2432_v54  ;;  %1112 = vmatprep.mubr.f32.mxu0 %v954_v19  ;;  %2139 = vset.pattern.permute.xlu0 %v2268_v20 }
 0x189   :  { %v955_v24 = vmax.f32 %v917_v21, 0.0  ;;  %1113 = vmatmul.mubr.f32.gmra.mrb[74].mxu0 %v953_v18  ;;  %623 = vperm.xlu0 %2139, %v248_v17  }
 0x18a   :  { %v956_v25 = vmax.f32 %v919_v23, 0.0  ;;  %v922_v26 = vpop.f32.mrb[46].mxu0 }
 0x18b   :  { %v923_v27 = vadd.f32 %v922_v26, %v2426_v52  ;;  %v924_v9 = vpop.f32.mrb[47].mxu0 }
 0x18c   :  { %v925_v29 = vadd.f32 %v924_v9, %v2432_v54  ;;  %1118 = vmatprep.mubr.f32.mxu0 %v956_v25 }
 0x18d   :  { %v957_v30 = vmax.f32 %v923_v27, 0.0  ;;  %1119 = vmatmul.mubr.f32.gmra.mrb[76].mxu0 %v955_v24 }
 0x18e   :  { %v958_v31 = vmax.f32 %v925_v29, 0.0 }
 0x190   :  { %1124 = vmatprep.mubr.f32.mxu0 %v958_v31 }
 0x191   :  { %1125 = vmatmul.mubr.f32.gmra.mrb[78].mxu0 %v957_v30 }
 0x208   :  { %v1806_v34 = vpop.f32.mrb[0].mxu1 }
 0x209   :  { %v532_v52 = vadd.f32 %v1806_v34, %v2472_v33  ;;  %v526_v35 = vpop.f32.mrb[1].mxu1 }
 0x20a   :  { %v527_v54 = vadd.f32 %v526_v35, %v2472_v33 }
 0x20b   :  { %v606_v37 = vmax.f32 %v532_v52, 0.0 }
 0x20c   :  { %v605_v38 = vmax.f32 %v527_v54, 0.0  ;;  %v1809_v39 = vpop.f32.mrb[2].mxu1 }
 0x20d   :  { %v542_v40 = vadd.f32 %v1809_v39, %v2472_v33  ;;  %v536_v41 = vpop.f32.mrb[3].mxu1 }
 0x20e   :  { %v1939_v44 = vpack.c.bf16 %v606_v37, %v605_v38  ;;  %v537_v45 = vadd.f32 %v536_v41, %v2472_v33 }
 0x20f   :  { %v608_v47 = vmax.f32 %v542_v40, 0.0 }
 0x210   :  { %v607_v48 = vmax.f32 %v537_v45, 0.0  ;;  %1941 = vmatpush3.bf16.xpose.msk.msra.mxu1 %vm2479_vm2, %v1939_v44  ;;  %v1812_v49 = vpop.f32.mrb[4].mxu1 }
 0x211   :  { %v552_v50 = vadd.f32 %v1812_v49, %v2472_v33  ;;  %v546_v51 = vpop.f32.mrb[5].mxu1  ;;  %1942 = vmatprep.subr.bf16.mxu1 %v2266_v32  ;;  %v2541_v49 = vld [vmem:[#allocation7 + $0x641] ss:$8 sm:$0x3] }
 0x212   :  { %v1943_v53 = vpack.c.bf16 %v608_v47, %v607_v48  ;;  %v547_v55 = vadd.f32 %v546_v51, %v2472_v33  ;;  %v203_v51 = vld [vmem:[#allocation7 + $0x400] sm:$0xff] }
 0x213   :  { %v610_v56 = vmax.f32 %v552_v50, 0.0 }
 0x214   :  { %v609_v57 = vmax.f32 %v547_v55, 0.0  ;;  %v1815_v58 = vpop.f32.mrb[6].mxu1  ;;  %v2548_v55 = vrot.slane %v2541_v49, %v762_v46  ;;  %v206_v46 = vld [vmem:[#allocation7 + $0x430] sm:$0xff] }
 0x215   :  { %v562_v59 = vadd.f32 %v1815_v58, %v2472_v33  ;;  %v556_v60 = vpop.f32.mrb[7].mxu1 }
 0x216   :  { %v1947_v61 = vpack.c.bf16 %v610_v56, %v609_v57  ;;  %v557_v62 = vadd.f32 %v556_v60, %v2472_v33 }
 0x217   :  { %v612_v63 = vmax.f32 %v562_v59, 0.0 }
 0x218   :  { %1945 = vmatpush3.bf16.xpose.msk.msra.mxu1 %vm2479_vm2, %v1943_v53  ;;  %v611_v0 = vmax.f32 %v557_v62, 0.0  ;;  %v1818_v1 = vpop.f32.mrb[8].mxu1  ;;  %v204_v53 = vld [vmem:[#allocation7 + $0x410] sm:$0xff] }
 0x219   :  { %1946 = vmatprep.subr.bf16.mxu1 %v2266_v32  ;;  %v572_v2 = vadd.f32 %v1818_v1, %v2472_v33  ;;  %v566_v3 = vpop.f32.mrb[9].mxu1  ;;  %v2066_v57 = vpack.c.bf16 %v204_v53, %v203_v51  ;;  %v188_v62 = vld [vmem:[#allocation7 + $0x310] sm:$0xff]  ;;  %v247_v1 = vld [vmem:[#allocation7 + $0x646] ss:$0 sm:$0xff] }
 0x21a   :  { %v1951_v4 = vpack.c.bf16 %v612_v63, %v611_v0  ;;  %v567_v5 = vadd.f32 %v566_v3, %v2472_v33  ;;  %v205_v0 = vld [vmem:[#allocation7 + $0x420] sm:$0xff]  ;;  %v196_v51 = vld [vmem:[#allocation7 + $0x390] sm:$0xff] }
 0x21b   :  { %v614_v6 = vmax.f32 %v572_v2, 0.0 }
 0x21c   :  { %v613_v7 = vmax.f32 %v567_v5, 0.0  ;;  %v1821_v8 = vpop.f32.mrb[10].mxu1  ;;  %v2070_v5 = vpack.c.bf16 %v206_v46, %v205_v0 }
 0x21d   :  { %v582_v10 = vadd.f32 %v1821_v8, %v2472_v33  ;;  %v576_v11 = vpop.f32.mrb[11].mxu1  ;;  %v207_v8 = vld [vmem:[#allocation7 + $0x440] sm:$0xff] }
 0x21e   :  { %v1955_v12 = vpack.c.bf16 %v614_v6, %v613_v7  ;;  %v577_v13 = vadd.f32 %v576_v11, %v2472_v33  ;;  %v189_v6 = vld [vmem:[#allocation7 + $0x320] sm:$0xff] }
 0x21f   :  { %v616_v14 = vmax.f32 %v582_v10, 0.0  ;;  %v208_v10 = vld [vmem:[#allocation7 + $0x450] sm:$0xff] }
 0x220   :  { %1949 = vmatpush3.bf16.xpose.msk.msra.mxu1 %vm2479_vm2, %v1947_v61  ;;  %v615_v15 = vmax.f32 %v577_v13, 0.0  ;;  %v1824_v16 = vpop.f32.mrb[12].mxu1  ;;  %v187_v61 = vld [vmem:[#allocation7 + $0x300] sm:$0xff] }
 0x221   :  { %1950 = vmatprep.subr.bf16.mxu1 %v2266_v32  ;;  %v592_v18 = vadd.f32 %v1824_v16, %v2472_v33  ;;  %v586_v19 = vpop.f32.mrb[13].mxu1  ;;  %v2068_v2 = vpack.c.bf16 %v188_v62, %v187_v61  ;;  %v192_v16 = vld [vmem:[#allocation7 + $0x350] sm:$0xff] }
 0x222   :  { %v1959_v21 = vpack.c.bf16 %v616_v14, %v615_v15  ;;  %v587_v22 = vadd.f32 %v586_v19, %v2472_v33  ;;  %v2074_v14 = vpack.c.bf16 %v208_v10, %v207_v8  ;;  %v191_v15 = vld [vmem:[#allocation7 + $0x340] sm:$0xff]  ;;  %v210_v19 = vld [vmem:[#allocation7 + $0x470] sm:$0xff] }
 0x223   :  { %v618_v23 = vmax.f32 %v592_v18, 0.0  ;;  %v209_v18 = vld [vmem:[#allocation7 + $0x460] sm:$0xff] }
 0x224   :  { %v617_v24 = vmax.f32 %v587_v22, 0.0  ;;  %v1827_v25 = vpop.f32.mrb[14].mxu1 }
 0x225   :  { %v602_v26 = vadd.f32 %v1827_v25, %v2472_v33  ;;  %v596_v27 = vpop.f32.mrb[15].mxu1  ;;  %v194_v25 = vld [vmem:[#allocation7 + $0x370] sm:$0xff] }
 0x226   :  { %v1963_v9 = vpack.c.bf16 %v618_v23, %v617_v24  ;;  %v597_v29 = vadd.f32 %v596_v27, %v2472_v33  ;;  %v2078_v23 = vpack.c.bf16 %v210_v19, %v209_v18  ;;  %v193_v24 = vld [vmem:[#allocation7 + $0x360] sm:$0xff] }
 0x227   :  { %v620_v30 = vmax.f32 %v602_v26, 0.0  ;;  %v211_v27 = vld [vmem:[#allocation7 + $0x480] sm:$0xff] }
 0x228   :  { %1953 = vmatpush3.bf16.xpose.msk.msra.mxu1 %vm2479_vm2, %v1951_v4  ;;  %v619_v31 = vmax.f32 %v597_v29, 0.0  ;;  %v2507_v34 = vpop.f32.mrb[48].mxu0 }
 0x229   :  { %1954 = vmatprep.subr.bf16.mxu1 %v2266_v32  ;;  %v1038_v52 = vpop.f32.mrb[49].mxu0 }
 0x22a   :  { %v1967_v35 = vpack.c.bf16 %v620_v30, %v619_v31  ;;  %v1039_v59 = vadd.f32 %v1038_v52, %v2548_v55  ;;  %v2080_v30 = vpack.c.bf16 %v194_v25, %v193_v24  ;;  %v201_v25 = vld [vmem:[#allocation7 + $0x3e0] sm:$0xff] }
 0x22c   :  { %v2510_v54 = vpop.f32.mrb[50].mxu0  ;;  %v1132_v3 = vmax.f32 %v1039_v59, 0.0  ;;  %v214_v59 = vld [vmem:[#allocation7 + $0x4b0] sm:$0xff] }
 0x22d   :  { %v2512_v37 = vpop.f32.mrb[51].mxu0 }
 0x230   :  { %1957 = vmatpush3.bf16.xpose.msk.msra.mxu1 %vm2479_vm2, %v1955_v12  ;;  %v2516_v38 = vpop.f32.mrb[52].mxu0  ;;  %v2072_v12 = vpack.c.bf16 %v190_v42, %v189_v6  ;;  %v216_v6 = vld [vmem:[#allocation7 + $0x4d0] sm:$0xff] }
 0x231   :  { %1958 = vmatprep.subr.bf16.mxu1 %v2266_v32  ;;  %v2519_v33 = vpop.f32.mrb[53].mxu0 }
 0x234   :  { %v2521_v39 = vpop.f32.mrb[54].mxu0 }
 0x235   :  { %v2523_v40 = vpop.f32.mrb[55].mxu0 }
 0x238   :  { %1961 = vmatpush3.bf16.xpose.msk.msra.mxu1 %vm2479_vm2, %v1959_v21  ;;  %v2527_v41 = vpop.f32.mrb[56].mxu0  ;;  %v2076_v21 = vpack.c.bf16 %v192_v16, %v191_v15  ;;  %v217_v16 = vld [vmem:[#allocation7 + $0x4e0] sm:$0xff] }
 0x239   :  { %1962 = vmatprep.subr.bf16.mxu1 %v2266_v32  ;;  %v2530_v44 = vpop.f32.mrb[57].mxu0 }
 0x23c   :  { %v2532_v45 = vpop.f32.mrb[58].mxu0 }
 0x23d   :  { %v2534_v47 = vpop.f32.mrb[59].mxu0 }
 0x240   :  { %1965 = vmatpush3.bf16.xpose.msk.msra.mxu1 %vm2479_vm2, %v1963_v9  ;;  %v2538_v48 = vpop.f32.mrb[60].mxu0  ;;  %v212_v9 = vld [vmem:[#allocation7 + $0x490] sm:$0xff] }
 0x241   :  { %1966 = vmatprep.subr.bf16.mxu1 %v2266_v32  ;;  %v2543_v50 = vpop.f32.mrb[61].mxu0  ;;  %v2082_v52 = vpack.c.bf16 %v212_v9, %v211_v27 }
 0x244   :  { %v2550_v56 = vpop.f32.mrb[62].mxu0 }
 0x245   :  { %v2552_v58 = vpop.f32.mrb[63].mxu0 }
 0x248   :  { %1969 = vmatpush3.bf16.xpose.msk.msra.mxu1 %vm2479_vm2, %v1967_v35  ;;  %v2557_v60 = vpop.f32.mrb[64].mxu0  ;;  %v195_v35 = vld [vmem:[#allocation7 + $0x380] sm:$0xff] }
 0x249   :  { %2067 = vmatprep.subr.bf16.mxu1 %v2066_v57  ;;  %v2559_v63 = vpop.f32.mrb[65].mxu0  ;;  %v213_v57 = vld [vmem:[#allocation7 + $0x4a0] sm:$0xff]  ;;  %v2084_v62 = vpack.c.bf16 %v196_v51, %v195_v35 }
 0x24a   :  { %v2086_v46 = vpack.c.bf16 %v214_v59, %v213_v57 }
 0x24c   :  { %v2561_v4 = vpop.f32.mrb[66].mxu0 }
 0x24d   :  { %v1092_v7 = vpop.f32.mrb[67].mxu0 }
 0x24e   :  { %v2564_v11 = vadd.f32 %v1092_v7, %v2548_v55 }
 0x24f   :  { %1861 = vmatmul.mubr.msk.f32.vlgmr.msra.gmra.mrb[16].mxu1 %vm411_vm0, %v247_v1  ;;  %v197_v1 = vld [vmem:[#allocation7 + $0x3a0] sm:$0xff] }
 0x250   :  { %2069 = vmatpush3.bf16.msra.mxu1 %v2068_v2  ;;  %1227 = vmatprep.mubr.f32.mxu1 %v1132_v3  ;;  %v2567_v13 = vpop.f32.mrb[68].mxu0  ;;  %v198_v2 = vld [vmem:[#allocation7 + $0x3b0] sm:$0xff] }
 0x251   :  { %2071 = vmatprep.subr.bf16.mxu1 %v2070_v5  ;;  %v1098_v17 = vpop.f32.mrb[69].mxu0  ;;  %v215_v5 = vld [vmem:[#allocation7 + $0x4c0] sm:$0xff]  ;;  %v2088_v7 = vpack.c.bf16 %v198_v2, %v197_v1 }
 0x252   :  { %v2570_v20 = vadd.f32 %v1098_v17, %v2548_v55  ;;  %v2090_v10 = vpack.c.bf16 %v216_v6, %v215_v5  ;;  %v218_v17 = vld [vmem:[#allocation7 + $0x4f0] sm:$0xff] }
 0x253   :  { %v2094_v24 = vpack.c.bf16 %v218_v17, %v217_v16 }
 0x254   :  { %2073 = vmatpush3.bf16.msra.mxu1 %v2072_v12  ;;  %v2572_v22 = vpop.f32.mrb[70].mxu0  ;;  %v199_v12 = vld [vmem:[#allocation7 + $0x3c0] sm:$0xff] }
 0x255   :  { %2075 = vmatprep.subr.bf16.mxu1 %v2074_v14  ;;  %v1104_v26 = vpop.f32.mrb[71].mxu0  ;;  %v200_v14 = vld [vmem:[#allocation7 + $0x3d0] sm:$0xff] }
 0x256   :  { %v2575_v29 = vadd.f32 %v1104_v26, %v2548_v55  ;;  %v2092_v19 = vpack.c.bf16 %v200_v14, %v199_v12  ;;  %v202_v26 = vld [vmem:[#allocation7 + $0x3f0] sm:$0xff] }
 0x258   :  { %2077 = vmatpush3.bf16.msra.mxu1 %v2076_v21  ;;  %v2577_v31 = vpop.f32.mrb[72].mxu0  ;;  %v1154_v17 = vmax.f32 %v2575_v29, 0.0 }
 0x259   :  { %2079 = vmatprep.subr.bf16.mxu1 %v2078_v23  ;;  %v1110_v53 = vpop.f32.mrb[73].mxu0  ;;  %v2597_v23 = vrot.slane %v2541_v49, %v758_v43  ;;  %v1051_v43 = vadd.f32 %v2519_v33, %v2548_v55  ;;  %v1063_v33 = vadd.f32 %v2530_v44, %v2548_v55  ;;  %v1075_v44 = vadd.f32 %v2543_v50, %v2548_v55 }
 0x25a   :  { %v2580_v61 = vadd.f32 %v1110_v53, %v2548_v55  ;;  %v1087_v50 = vadd.f32 %v2559_v63, %v2548_v55 }
 0x25b   :  { %v1037_v35 = vadd.f32 %v2507_v34, %v2597_v23  ;;  %v1043_v51 = vadd.f32 %v2510_v54, %v2597_v23  ;;  %v1136_v53 = vmax.f32 %v1051_v43, 0.0  ;;  %v1049_v34 = vadd.f32 %v2516_v38, %v2597_v23 }
 0x25c   :  { %2081 = vmatpush3.bf16.msra.mxu1 %v2080_v30  ;;  %v2582_v0 = vpop.f32.mrb[74].mxu0  ;;  %v1045_v30 = vadd.f32 %v2512_v37, %v2548_v55  ;;  %v1057_v37 = vadd.f32 %v2523_v40, %v2548_v55  ;;  %v1055_v54 = vadd.f32 %v2521_v39, %v2597_v23  ;;  %v1069_v40 = vadd.f32 %v2534_v47, %v2548_v55 }
 0x25d   :  { %2083 = vmatprep.subr.bf16.mxu1 %v2082_v52  ;;  %v1116_v3 = vpop.f32.mrb[75].mxu0  ;;  %v2096_v52 = vpack.c.bf16 %v202_v26, %v201_v25  ;;  %v1131_v49 = vmax.f32 %v1037_v35, 0.0  ;;  %v1133_v57 = vmax.f32 %v1043_v51, 0.0  ;;  %v1061_v38 = vadd.f32 %v2527_v41, %v2597_v23  ;;  %v2664_v35 = vld [vmem:[#allocation7 + $0x642] ss:$0 sm:$0xff] }
 0x25e   :  { %v2585_v42 = vadd.f32 %v1116_v3, %v2548_v55  ;;  %v1134_v36 = vmax.f32 %v1045_v30, 0.0  ;;  %v1138_v59 = vmax.f32 %v1057_v37, 0.0  ;;  %v1137_v1 = vmax.f32 %v1055_v54, 0.0 }
 0x25f   :  { %v1142_v2 = vmax.f32 %v1069_v40, 0.0  ;;  %v1139_v3 = vmax.f32 %v1061_v38, 0.0  ;;  %v1067_v39 = vadd.f32 %v2532_v45, %v2597_v23  ;;  %v1144_v5 = vmax.f32 %v1075_v44, 0.0 }
 0x260   :  { %2085 = vmatpush3.bf16.msra.mxu1 %v2084_v62  ;;  %v2587_v8 = vpop.f32.mrb[76].mxu0  ;;  %v1135_v62 = vmax.f32 %v1049_v34, 0.0  ;;  %v1081_v47 = vadd.f32 %v2552_v58, %v2548_v55  ;;  %v1073_v41 = vadd.f32 %v2538_v48, %v2597_v23  ;;  %v1079_v45 = vadd.f32 %v2550_v56, %v2597_v23  ;;  %v75_v34 = vld [vmem:[#allocation5] sm:$0xff] }
 0x261   :  { %2087 = vmatprep.subr.bf16.mxu1 %v2086_v46  ;;  %v1122_v15 = vpop.f32.mrb[77].mxu0  ;;  %v1140_v46 = vmax.f32 %v1063_v33, 0.0  ;;  %v1141_v6 = vmax.f32 %v1067_v39, 0.0  ;;  %v1148_v12 = vmax.f32 %v1087_v50, 0.0  ;;  %v1085_v58 = vadd.f32 %v2557_v60, %v2597_v23 }
 0x262   :  { %v2590_v18 = vadd.f32 %v1122_v15, %v2548_v55  ;;  %v1145_v14 = vmax.f32 %v1079_v45, 0.0  ;;  %v1150_v48 = vmax.f32 %v2564_v11, 0.0  ;;  %v1091_v16 = vadd.f32 %v2561_v4, %v2597_v23 }
 0x263   :  { %v1147_v15 = vmax.f32 %v1085_v58, 0.0  ;;  %v1097_v63 = vadd.f32 %v2567_v13, %v2597_v23  ;;  %v1103_v11 = vadd.f32 %v2572_v22, %v2597_v23  ;;  %v1115_v29 = vadd.f32 %v2582_v0, %v2597_v23  ;;  %v624_v0 = vpop.permute.xlu0 %623 }
 0x264   :  { %2089 = vmatpush3.bf16.msra.mxu1 %v2088_v7  ;;  %v2592_v21 = vpop.f32.mrb[78].mxu0  ;;  %v1146_v7 = vmax.f32 %v1081_v47, 0.0  ;;  %v1149_v56 = vmax.f32 %v1091_v16, 0.0  ;;  %v1160_v25 = vmax.f32 %v2590_v18, 0.0 }
 0x265   :  { %2091 = vmatprep.subr.bf16.mxu1 %v2090_v10  ;;  %v1128_v27 = vpop.f32.mrb[79].mxu0  ;;  %v1143_v10 = vmax.f32 %v1073_v41, 0.0  ;;  %v1151_v60 = vmax.f32 %v1097_v63, 0.0  ;;  %v1153_v4 = vmax.f32 %v1103_v11, 0.0  ;;  %v1157_v22 = vmax.f32 %v1115_v29, 0.0  ;;  %v78_v41 = vld [vmem:[#allocation5 + $0x18] sm:$0xff] }
 0x266   :  { %v2600_v9 = vadd.f32 %v1128_v27, %v2548_v55  ;;  %v1152_v55 = vmax.f32 %v2570_v20, 0.0  ;;  %v1109_v20 = vadd.f32 %v2577_v31, %v2597_v23  ;;  %v80_v11 = vld [vmem:[#allocation5 + $0x28] sm:$0xff] }
 0x268   :  { %2093 = vmatpush3.bf16.msra.mxu1 %v2092_v19  ;;  %v1156_v19 = vmax.f32 %v2580_v61, 0.0  ;;  %v1155_v13 = vmax.f32 %v1109_v20, 0.0  ;;  %v1121_v61 = vadd.f32 %v2587_v8, %v2597_v23  ;;  %v1162_v26 = vmax.f32 %v2600_v9, 0.0 }
 0x269   :  { %2095 = vmatprep.subr.bf16.mxu1 %v2094_v24  ;;  %v1158_v24 = vmax.f32 %v2585_v42, 0.0  ;;  %v1127_v42 = vadd.f32 %v2592_v21, %v2597_v23 }
 0x26a   :  { %v1159_v31 = vmax.f32 %v1121_v61, 0.0 }
 0x26b   :  { %v1161_v27 = vmax.f32 %v1127_v42, 0.0 }
 0x26c   :  { %2097 = vmatpush3.bf16.msra.mxu1 %v2096_v52 }
 0x26d   :  { %2098 = vmatprep.subr.bf16.mxu1 %v2266_v32 }
 0x26f   :  { %1228 = vmatmul.mubr.f32.vlgmr.msra.gmra.mrb[18].mxu1 %v1131_v49 }
 0x270   :  { %1232 = vmatprep.mubr.f32.mxu1 %v1134_v36 }
 0x273   :  { %1233 = vmatmul.mubr.f32.gmra.mrb[20].mxu1 %v1133_v57 }
 0x274   :  { %1237 = vmatprep.mubr.f32.mxu1 %v1136_v53 }
 0x277   :  { %1238 = vmatmul.mubr.f32.gmra.mrb[22].mxu1 %v1135_v62 }
 0x278   :  { %1242 = vmatprep.mubr.f32.mxu1 %v1138_v59  ;;  %v76_v59 = vld [vmem:[#allocation5 + $0x8] sm:$0xff] }
 0x27b   :  { %1243 = vmatmul.mubr.f32.gmra.mrb[24].mxu1 %v1137_v1 }
 0x27c   :  { %1247 = vmatprep.mubr.f32.mxu1 %v1140_v46 }
 0x27f   :  { %1248 = vmatmul.mubr.f32.gmra.mrb[26].mxu1 %v1139_v3 }
 0x280   :  { %1252 = vmatprep.mubr.f32.mxu1 %v1142_v2 }
 0x283   :  { %1253 = vmatmul.mubr.f32.gmra.mrb[28].mxu1 %v1141_v6  ;;  %v77_v6 = vld [vmem:[#allocation5 + $0x10] sm:$0xff] }
 0x284   :  { %1257 = vmatprep.mubr.f32.mxu1 %v1144_v5 }
 0x287   :  { %1258 = vmatmul.mubr.f32.gmra.mrb[30].mxu1 %v1143_v10 }
 0x288   :  { %1262 = vmatprep.mubr.f32.mxu1 %v1146_v7 }
 0x28b   :  { %1263 = vmatmul.mubr.f32.gmra.mrb[32].mxu1 %v1145_v14 }
 0x28c   :  { %1267 = vmatprep.mubr.f32.mxu1 %v1148_v12 }
 0x28f   :  { %1268 = vmatmul.mubr.f32.gmra.mrb[34].mxu1 %v1147_v15 }
 0x290   :  { %1272 = vmatprep.mubr.f32.mxu1 %v1150_v48 }
 0x293   :  { %1273 = vmatmul.mubr.f32.gmra.mrb[36].mxu1 %v1149_v56 }
 0x294   :  { %1277 = vmatprep.mubr.f32.mxu1 %v1152_v55 }
 0x297   :  { %1278 = vmatmul.mubr.f32.gmra.mrb[38].mxu1 %v1151_v60  ;;  %v79_v60 = vld [vmem:[#allocation5 + $0x20] sm:$0xff] }
 0x298   :  { %1282 = vmatprep.mubr.f32.mxu1 %v1154_v17 }
 0x29b   :  { %1283 = vmatmul.mubr.f32.gmra.mrb[40].mxu1 %v1153_v4 }
 0x29c   :  { %1287 = vmatprep.mubr.f32.mxu1 %v1156_v19 }
 0x29f   :  { %1288 = vmatmul.mubr.f32.gmra.mrb[42].mxu1 %v1155_v13 }
 0x2a0   :  { %1292 = vmatprep.mubr.f32.mxu1 %v1158_v24 }
 0x2a3   :  { %1293 = vmatmul.mubr.f32.gmra.mrb[44].mxu1 %v1157_v22 }
 0x2a4   :  { %1297 = vmatprep.mubr.f32.mxu1 %v1160_v25 }
 0x2a7   :  { %1298 = vmatmul.mubr.f32.gmra.mrb[46].mxu1 %v1159_v31 }
 0x2a8   :  { %1302 = vmatprep.mubr.f32.mxu1 %v1162_v26 }
 0x2ab   :  { %1303 = vmatmul.mubr.f32.gmra.mrb[48].mxu1 %v1161_v27 }
 0x2ac   :  { %1895 = vmatprep.mubr.msk.f32.mxu1 %vm2267_vm1, %v2265_v28  ;;  %v2669_v28 = vld [vmem:[#allocation7 + $0x643] ss:$0 sm:$0xff] }
 0x322   :  { %v743_v18 = vpop.f32.mrb[16].mxu1 }
 0x323   :  { %v2660_v30 = vadd.f32 %v743_v18, %v624_v0  ;;  %v1862_v8 = vpop.f32.mrb[17].mxu1 }
 0x324   :  { %v81_v8 = vld [vmem:[#allocation5 + $0x30] sm:$0xff] }
 0x325   :  { %v748_v9 = vsel %vm747_vm3, %v2660_v30, inf }
 0x326   :  { %749 = vmin.xlane.f32.xlu1 %v748_v9  ;;  %v82_v9 = vld [vmem:[#allocation5 + $0x38] sm:$0xff] }
 0x342   :  { %v1675_v52 = vpop.f32.mrb[18].mxu1 }
 0x343   :  { %v1676_v21 = vpop.f32.mrb[19].mxu1 }
 0x344   :  { %v1677_v23 = vadd.f32 %v1676_v21, %v1675_v52 }
 0x346   :  { %v2667_v36 = vadd.f32 %v1677_v23, %v2664_v35  ;;  %v1678_v43 = vpop.f32.mrb[20].mxu1 }
 0x347   :  { %v1679_v49 = vpop.f32.mrb[21].mxu1 }
 0x348   :  { %v1680_v51 = vadd.f32 %v1679_v49, %v1678_v43  ;;  %v1342_v53 = vmul.f32 %v2667_v36, %v2669_v28 }
 0x34a   :  { %v2674_v37 = vadd.f32 %v1680_v51, %v2664_v35  ;;  %v1681_v57 = vpop.f32.mrb[22].mxu1  ;;  %v1358_v46 = vmul.f32 %v1342_v53, %v75_v34 }
 0x34b   :  { %v1682_v33 = vpop.f32.mrb[23].mxu1 }
 0x34c   :  { %v1343_v62 = vmul.f32 %v2674_v37, %v2669_v28  ;;  %v1683_v54 = vadd.f32 %v1682_v33, %v1681_v57 }
 0x34e   :  { %v1359_v40 = vmul.f32 %v1343_v62, %v76_v59  ;;  %v2679_v1 = vadd.f32 %v1683_v54, %v2664_v35  ;;  %v1684_v38 = vpop.f32.mrb[24].mxu1 }
 0x34f   :  { %v1685_v2 = vpop.f32.mrb[25].mxu1 }
 0x350   :  { %v1686_v44 = vadd.f32 %v1685_v2, %v1684_v38  ;;  %v2099_v3 = vpack.c.bf16 %v1359_v40, %v1358_v46  ;;  %v1344_v39 = vmul.f32 %v2679_v1, %v2669_v28  ;;  %v83_v46 = vld [vmem:[#allocation5 + $0x40] sm:$0xff]  ;;  %v84_v40 = vld [vmem:[#allocation5 + $0x48] sm:$0xff] }
 0x352   :  { %v2684_v5 = vadd.f32 %v1686_v44, %v2664_v35  ;;  %v1687_v47 = vpop.f32.mrb[26].mxu1  ;;  %2100 = vmatpush3.bf16.xpose.msra.mxu1 %v2099_v3  ;;  %v1360_v45 = vmul.f32 %v1344_v39, %v77_v6 }
 0x353   :  { %v1688_v7 = vpop.f32.mrb[27].mxu1  ;;  %2101 = vmatprep.subr.bf16.mxu1 %v2266_v32 }
 0x354   :  { %v1345_v50 = vmul.f32 %v2684_v5, %v2669_v28  ;;  %v1689_v10 = vadd.f32 %v1688_v7, %v1687_v47 }
 0x356   :  { %v1361_v12 = vmul.f32 %v1345_v50, %v78_v41  ;;  %v1250_v14 = vadd.f32 %v1689_v10, %v2664_v35  ;;  %v1690_v58 = vpop.f32.mrb[28].mxu1 }
 0x357   :  { %v1691_v48 = vpop.f32.mrb[29].mxu1 }
 0x358   :  { %v1308_v15 = vmin.f32 %v2667_v36, %v1250_v14  ;;  %v1692_v16 = vadd.f32 %v1691_v48, %v1690_v58  ;;  %v2102_v55 = vpack.c.bf16 %v1361_v12, %v1360_v45  ;;  %v1346_v56 = vmul.f32 %v1250_v14, %v2669_v28  ;;  %v85_v14 = vld [vmem:[#allocation5 + $0x50] sm:$0xff]  ;;  %v86_v58 = vld [vmem:[#allocation5 + $0x58] sm:$0xff] }
 0x35a   :  { %v1255_v63 = vadd.f32 %v1692_v16, %v2664_v35  ;;  %v1693_v17 = vpop.f32.mrb[30].mxu1  ;;  %2103 = vmatpush3.bf16.xpose.msra.mxu1 %v2102_v55  ;;  %v1362_v13 = vmul.f32 %v1346_v56, %v79_v60 }
 0x35b   :  { %v1694_v19 = vpop.f32.mrb[31].mxu1  ;;  %2104 = vmatprep.subr.bf16.mxu1 %v2266_v32 }
 0x35c   :  { %v1309_v4 = vmin.f32 %v2674_v37, %v1255_v63  ;;  %v1347_v20 = vmul.f32 %v1255_v63, %v2669_v28  ;;  %v1695_v24 = vadd.f32 %v1694_v19, %v1693_v17 }
 0x35e   :  { %v1363_v29 = vmul.f32 %v1347_v20, %v80_v11  ;;  %v1260_v25 = vadd.f32 %v1695_v24, %v2664_v35  ;;  %v1696_v22 = vpop.f32.mrb[32].mxu1 }
 0x35f   :  { %v1697_v61 = vpop.f32.mrb[33].mxu1 }
 0x360   :  { %v1310_v26 = vmin.f32 %v2679_v1, %v1260_v25  ;;  %v1698_v31 = vadd.f32 %v1697_v61, %v1696_v22  ;;  %v2105_v42 = vpack.c.bf16 %v1363_v29, %v1362_v13  ;;  %v1348_v27 = vmul.f32 %v1260_v25, %v2669_v28  ;;  %v87_v25 = vld [vmem:[#allocation5 + $0x60] sm:$0xff]  ;;  %v88_v22 = vld [vmem:[#allocation5 + $0x68] sm:$0xff] }
 0x362   :  { %v1265_v0 = vadd.f32 %v1698_v31, %v2664_v35  ;;  %v1699_v18 = vpop.f32.mrb[34].mxu1  ;;  %2106 = vmatpush3.bf16.xpose.msra.mxu1 %v2105_v42  ;;  %v1364_v43 = vmul.f32 %v1348_v27, %v81_v8 }
 0x363   :  { %v1700_v52 = vpop.f32.mrb[35].mxu1  ;;  %2107 = vmatprep.subr.bf16.mxu1 %v2266_v32 }
 0x364   :  { %v1311_v21 = vmin.f32 %v2684_v5, %v1265_v0  ;;  %v1349_v23 = vmul.f32 %v1265_v0, %v2669_v28  ;;  %v1701_v36 = vadd.f32 %v1700_v52, %v1699_v18 }
 0x366   :  { %v1365_v49 = vmul.f32 %v1349_v23, %v82_v9  ;;  %v1270_v51 = vadd.f32 %v1701_v36, %v2664_v35  ;;  %v1702_v53 = vpop.f32.mrb[36].mxu1 }
 0x367   :  { %v1703_v37 = vpop.f32.mrb[37].mxu1 }
 0x368   :  { %v1312_v57 = vmin.f32 %v1308_v15, %v1270_v51  ;;  %v1704_v34 = vadd.f32 %v1703_v37, %v1702_v53  ;;  %v2108_v59 = vpack.c.bf16 %v1365_v49, %v1364_v43  ;;  %v1350_v33 = vmul.f32 %v1270_v51, %v2669_v28  ;;  %v89_v51 = vld [vmem:[#allocation5 + $0x70] sm:$0xff]  ;;  %v90_v53 = vld [vmem:[#allocation5 + $0x78] sm:$0xff] }
 0x36a   :  { %v1275_v62 = vadd.f32 %v1704_v34, %v2664_v35  ;;  %v1705_v54 = vpop.f32.mrb[38].mxu1  ;;  %2109 = vmatpush3.bf16.xpose.msra.mxu1 %v2108_v59  ;;  %v1366_v3 = vmul.f32 %v1350_v33, %v83_v46 }
 0x36b   :  { %v1706_v1 = vpop.f32.mrb[39].mxu1  ;;  %2110 = vmatprep.subr.bf16.mxu1 %v2266_v32 }
 0x36c   :  { %v1313_v38 = vmin.f32 %v1309_v4, %v1275_v62  ;;  %v1351_v2 = vmul.f32 %v1275_v62, %v2669_v28  ;;  %v1707_v44 = vadd.f32 %v1706_v1, %v1705_v54  ;;  %v249_v1 = vld [vmem:[#allocation7 + $0x650] sm:$0xff] }
 0x36e   :  { %v1367_v39 = vmul.f32 %v1351_v2, %v84_v40  ;;  %v1280_v5 = vadd.f32 %v1707_v44, %v2664_v35  ;;  %v1708_v47 = vpop.f32.mrb[40].mxu1 }
 0x36f   :  { %v1709_v6 = vpop.f32.mrb[41].mxu1 }
 0x370   :  { %v1314_v41 = vmin.f32 %v1310_v26, %v1280_v5  ;;  %v1710_v7 = vadd.f32 %v1709_v6, %v1708_v47  ;;  %v2111_v50 = vpack.c.bf16 %v1367_v39, %v1366_v3  ;;  %v1352_v10 = vmul.f32 %v1280_v5, %v2669_v28 }
 0x372   :  { %v1285_v45 = vadd.f32 %v1710_v7, %v2664_v35  ;;  %v1711_v12 = vpop.f32.mrb[42].mxu1  ;;  %2112 = vmatpush3.bf16.xpose.msra.mxu1 %v2111_v50  ;;  %v1368_v56 = vmul.f32 %v1352_v10, %v85_v14  ;;  %v1444_v14 = vmul.f32 %v2660_v30, %v2660_v30 }
 0x373   :  { %v1712_v48 = vpop.f32.mrb[43].mxu1  ;;  %2113 = vmatprep.subr.bf16.mxu1 %v2266_v32 }
 0x374   :  { %v1315_v15 = vmin.f32 %v1311_v21, %v1285_v45  ;;  %v1353_v16 = vmul.f32 %v1285_v45, %v2669_v28  ;;  %v1713_v55 = vadd.f32 %v1712_v48, %v1711_v12 }
 0x376   :  { %v1369_v63 = vmul.f32 %v1353_v16, %v86_v58  ;;  %v1290_v17 = vadd.f32 %v1713_v55, %v2664_v35  ;;  %v1714_v60 = vpop.f32.mrb[44].mxu1  ;;  %v1445_v58 = vmul.f32 %v1444_v14, %v2660_v30 }
 0x377   :  { %v1715_v11 = vpop.f32.mrb[45].mxu1 }
 0x378   :  { %v1316_v19 = vmin.f32 %v1312_v57, %v1290_v17  ;;  %v1716_v4 = vadd.f32 %v1715_v11, %v1714_v60  ;;  %v2114_v20 = vpack.c.bf16 %v1369_v63, %v1368_v56  ;;  %v1354_v24 = vmul.f32 %v1290_v17, %v2669_v28 }
 0x379   :  { %v1446_v48 = vsub.f32 %v2660_v30, %v1445_v58 }
 0x37a   :  { %v1295_v13 = vadd.f32 %v1716_v4, %v2664_v35  ;;  %v1717_v29 = vpop.f32.mrb[46].mxu1  ;;  %2115 = vmatpush3.bf16.xpose.msra.mxu1 %v2114_v20  ;;  %v1370_v27 = vmul.f32 %v1354_v24, %v87_v25 }
 0x37b   :  { %v1718_v61 = vpop.f32.mrb[47].mxu1  ;;  %2116 = vmatprep.subr.bf16.mxu1 %v2266_v32 }
 0x37c   :  { %v1317_v26 = vmin.f32 %v1313_v38, %v1295_v13  ;;  %v1355_v31 = vmul.f32 %v1295_v13, %v2669_v28  ;;  %v1719_v42 = vadd.f32 %v1718_v61, %v1717_v29 }
 0x37e   :  { %v1320_v0 = vmin.f32 %v1316_v19, %v1317_v26  ;;  %v1371_v18 = vmul.f32 %v1355_v31, %v88_v22  ;;  %v1300_v8 = vadd.f32 %v1719_v42, %v2664_v35  ;;  %v1720_v9 = vpop.f32.mrb[48].mxu1 }
 0x37f   :  { %v1721_v52 = vpop.f32.mrb[49].mxu1 }
 0x380   :  { %v1318_v21 = vmin.f32 %v1314_v41, %v1300_v8  ;;  %v1722_v23 = vadd.f32 %v1721_v52, %v1720_v9  ;;  %v2117_v36 = vpack.c.bf16 %v1371_v18, %v1370_v27  ;;  %v1356_v43 = vmul.f32 %v1300_v8, %v2669_v28 }
 0x382   :  { %v1305_v49 = vadd.f32 %v1722_v23, %v2664_v35  ;;  %2118 = vmatpush3.bf16.xpose.msra.mxu1 %v2117_v36  ;;  %v1372_v34 = vmul.f32 %v1356_v43, %v89_v51 }
 0x383   :  { %2119 = vmatprep.subr.bf16.mxu1 %v2266_v32 }
 0x384   :  { %v1319_v37 = vmin.f32 %v1315_v15, %v1305_v49  ;;  %v1357_v57 = vmul.f32 %v1305_v49, %v2669_v28  ;;  %v1447_v15 = vmul.f32 0.125, %v1446_v48 }
 0x386   :  { %v1321_v59 = vmin.f32 %v1318_v21, %v1319_v37  ;;  %v1373_v33 = vmul.f32 %v1357_v57, %v90_v53  ;;  %v1448_v16 = vsub.f32 %v2660_v30, %v1447_v15 }
 0x388   :  { %v1322_v62 = vmin.f32 %v1320_v0, %v1321_v59  ;;  %v2120_v54 = vpack.c.bf16 %v1373_v33, %v1372_v34 }
 0x38a   :  { %2121 = vmatpush3.bf16.xpose.msra.mxu1 %v2120_v54  ;;  %v1323_v46 = vrot.slane %v1322_v62, 4 }
 0x38c   :  { %v1324_v40 = vmin.f32 %v1322_v62, %v1323_v46 }
 0x38e   :  { %v1325_v38 = vrot.slane %v1324_v40, 2 }
 0x390   :  { %v1326_v2 = vmin.f32 %v1324_v40, %v1325_v38 }
 0x391   :  { %1896 = vmatmul.mubr.f32.vlgmr.msra.gmra.mrb[50].mxu1 %v249_v1 }
 0x392   :  { %v1327_v35 = vrot.slane %v1326_v2, 1 }
 0x394   :  { %v1328_v44 = vmin.f32 %v1326_v2, %v1327_v35 }
 0x396   :  { %v1329_v3 = vmin.f32 %v1328_v44, 0.0 }
 0x398   :  { %v1330_v39 = vmul.f32 %v1329_v3, %v1329_v3 }
 0x39a   :  { %v1331_v32 = vsel %vm747_vm3, %v1330_v39, 0.0 }
 0x39b   :  { %1332 = vadd.xlane.f32.xlu0 %v1331_v32 }
 0x3b3   :  { %v750_v28 = vpop.xlane.xlu1 %749 }
 0x3b4   :  { %v751_v5 = vmin.f32 %v750_v28, 0.0 }
 0x3b6   :  { %v752_v47 = vmul.f32 %v751_v5, %v751_v5 }
 0x3b8   :  { %2122 = vpush %v752_v47 }
 0x3e9   :  { %s2123_s2 = spop %2122 }
 0x428   :  { %v1333_v6 = vpop.xlane.xlu0 %1332 }
 0x429   :  { %v1334_v41 = vrot.slane %v1333_v6, 4 }
 0x42b   :  { %v1335_v7 = vadd.f32 %v1334_v41, %v1333_v6 }
 0x42d   :  { %v1336_v50 = vrot.slane %v1335_v7, 2 }
 0x42f   :  { %v1337_v10 = vadd.f32 %v1336_v50, %v1335_v7 }
 0x431   :  { %v1338_v45 = vrot.slane %v1337_v10, 1 }
 0x433   :  { %v1339_v12 = vadd.f32 %v1338_v45, %v1337_v10 }
 0x435   :  { %2124 = vpush %v1339_v12 }
 0x464   :  { %v2729_v55 = vpop.f32.mrb[50].mxu1 }
 0x465   :  { %v1449_v56 = vadd.f32 %v1448_v16, %v2729_v55  ;;  %v1897_v63 = vpop.f32.mrb[51].mxu1 }
 0x466   :  { %s2125_s29 = spop %2124 }
 0x467   :  { %v1450_v17 = vmul.f32 %v1449_v56, %v1449_v56  ;;  %s1341_s30 = sadd.f32 %s2125_s29, %s2123_s2 }
 0x469   :  { %v1451_v60 = vmul.f32 %v1450_v17, %v1449_v56  ;;  %v1508_v11 = vstv %s1341_s30 }
 0x46a   :  { %1510 = vst.msk [vmem:[#allocation9] sm:$0x1] %vm1509_vm4, %v1508_v11 }
 0x46b   :  { %v1452_v19 = vsub.f32 %v1449_v56, %v1451_v60 }
 0x46c   :  { %2217 = shalt.err (!%p2214_p0)
}
 0x46d   :  { %s2218_s9 = scalar_lea.hbm %s2767_s4, 16 }
 0x46e   :  { %p2219_p1 = scmp.ne.s32.totalorder %s2767_s4, %s2218_s9  ;;  %p2222_p2 = scmp.lt.u32.totalorder %s2218_s9, %s2767_s4 }
 0x470   :  { %p2224_p3 = pnand %p2222_p2, %p2219_p1 }
 0x472   :  { %2227 = shalt.err (!%p2224_p3)
}
 0x473   :  { %1530 = dma.vmem_to_hbm [thread:$0]  %s1528_s28, 16, %s2767_s4, [#allocation10]   ;;  %v1453_v30 = vmul.f32 0.125, %v1452_v19  ;;  %v1456_v20 = vrot.slane %v2729_v55, 1  ;;  %v1464_v26 = vrot.slane %v2729_v55, 2  ;;  %v1472_v9 = vrot.slane %v2729_v55, 3 }
 0x474   :  { %v1480_v51 = vrot.slane %v2729_v55, 4  ;;  %v1488_v62 = vrot.slane %v2729_v55, 5  ;;  %v1496_v35 = vrot.slane %v2729_v55, 6  ;;  %s2270_s4 = smov [#allocation8]   ;;  %v1504_v47 = vrot.slane %v2729_v55, 7 }
 0x475   :  { %v1454_v4 = vsub.f32 %v1449_v56, %v1453_v30  ;;  %s1517_s15 = sshll.u32 %s2270_s4, 4  ;;  %s1518_s15 = int_to_ptr.vmem [resolvable:$true] %s1517_s15 }
 0x476   :  { %s2228_s16 = scalar_lea.vmem %s1518_s15, 16  ;;  %s2232_s17 = scalar_lea.vmem %s1518_s15, 32 }
 0x477   :  { %v1458_v24 = vadd.f32 %v1456_v20, %v1454_v4  ;;  %p2229_p4 = scmp.ne.s32.totalorder %s1518_s15, %s2228_s16  ;;  %p2233_p5 = scmp.lt.s32.totalorder %s1518_s15, %s1518_s15 }
 0x478   :  { %p2234_p6 = scmp.lt.s32.totalorder %s2232_s17, %s2228_s16 }
 0x479   :  { %v1459_v13 = vmul.f32 %v1458_v24, %v1458_v24 }
 0x47a   :  { %p2235_p7 = por %p2234_p6, %p2233_p5 }
 0x47b   :  { %v1460_v29 = vmul.f32 %v1459_v13, %v1458_v24 }
 0x47c   :  { %p2236_p8 = pnand %p2235_p7, %p2229_p4 }
 0x47d   :  { %v1461_v25 = vsub.f32 %v1458_v24, %v1460_v29 }
 0x47f   :  { %v1462_v22 = vmul.f32 0.125, %v1461_v25 }
 0x481   :  { %v1463_v61 = vsub.f32 %v1458_v24, %v1462_v22 }
 0x483   :  { %v1466_v31 = vadd.f32 %v1464_v26, %v1463_v61 }
 0x485   :  { %v1467_v42 = vmul.f32 %v1466_v31, %v1466_v31 }
 0x487   :  { %v1468_v27 = vmul.f32 %v1467_v42, %v1466_v31 }
 0x489   :  { %v1469_v0 = vsub.f32 %v1466_v31, %v1468_v27 }
 0x48b   :  { %v1470_v18 = vmul.f32 0.125, %v1469_v0 }
 0x48d   :  { %v1471_v8 = vsub.f32 %v1466_v31, %v1470_v18 }
 0x48f   :  { %v1474_v52 = vadd.f32 %v1472_v9, %v1471_v8 }
 0x491   :  { %v1475_v21 = vmul.f32 %v1474_v52, %v1474_v52 }
 0x493   :  { %v1476_v23 = vmul.f32 %v1475_v21, %v1474_v52 }
 0x495   :  { %v1477_v36 = vsub.f32 %v1474_v52, %v1476_v23 }
 0x497   :  { %v1478_v43 = vmul.f32 0.125, %v1477_v36 }
 0x499   :  { %v1479_v49 = vsub.f32 %v1474_v52, %v1478_v43 }
 0x49b   :  { %v1482_v53 = vadd.f32 %v1480_v51, %v1479_v49 }
 0x49d   :  { %v1483_v37 = vmul.f32 %v1482_v53, %v1482_v53 }
 0x49f   :  { %v1484_v57 = vmul.f32 %v1483_v37, %v1482_v53 }
 0x4a1   :  { %v1485_v34 = vsub.f32 %v1482_v53, %v1484_v57 }
 0x4a3   :  { %v1486_v59 = vmul.f32 0.125, %v1485_v34 }
 0x4a5   :  { %v1487_v33 = vsub.f32 %v1482_v53, %v1486_v59 }
 0x4a7   :  { %v1490_v54 = vadd.f32 %v1488_v62, %v1487_v33 }
 0x4a9   :  { %v1491_v46 = vmul.f32 %v1490_v54, %v1490_v54 }
 0x4ab   :  { %v1492_v40 = vmul.f32 %v1491_v46, %v1490_v54 }
 0x4ad   :  { %v1493_v1 = vsub.f32 %v1490_v54, %v1492_v40 }
 0x4af   :  { %v1494_v38 = vmul.f32 0.125, %v1493_v1 }
 0x4b1   :  { %v1495_v2 = vsub.f32 %v1490_v54, %v1494_v38 }
 0x4b3   :  { %v1498_v44 = vadd.f32 %v1496_v35, %v1495_v2 }
 0x4b5   :  { %v1499_v3 = vmul.f32 %v1498_v44, %v1498_v44 }
 0x4b7   :  { %v1500_v39 = vmul.f32 %v1499_v3, %v1498_v44 }
 0x4b9   :  { %v1501_v32 = vsub.f32 %v1498_v44, %v1500_v39 }
 0x4bb   :  { %v1502_v28 = vmul.f32 0.125, %v1501_v32 }
 0x4bd   :  { %v1503_v5 = vsub.f32 %v1498_v44, %v1502_v28 }
 0x4bf   :  { %v1506_v6 = vadd.f32 %v1504_v47, %v1503_v5 }
 0x4c1   :  { %1507 = vst [vmem:[#allocation8] sm:$0x1] %v1506_v6 }
 0x4c2   :  { %2239 = shalt.err (!%p2236_p8)
}
 0x4c3   :  { %s2240_s21 = scalar_lea.hbm %s2766_s3, 16 }
 0x4c4   :  { %p2241_p9 = scmp.ne.s32.totalorder %s2766_s3, %s2240_s21  ;;  %p2244_p10 = scmp.lt.u32.totalorder %s2240_s21, %s2766_s3 }
 0x4c6   :  { %p2246_p11 = pnand %p2244_p10, %p2241_p9 }
 0x4c8   :  { %2249 = shalt.err (!%p2246_p11)
}
 0x4c9   :  { %1520 = dma.vmem_to_hbm [thread:$0]  %s1518_s15, 16, %s2766_s3, [#allocation4]  }
 0x4ca   :  { %2254 = dma.done.wait [#allocation4], 16  }
 0x4cb   :  { %2255 = vsyncadd [#allocation4], 4294967280 }
 0x4cc   :  { %2256 = dma.done.wait [#allocation10], 16  }
 0x4cd   :  { %2257 = vsyncadd [#allocation10], 4294967280 }
 0x4ce   :  { %1537 = vsyncpa [#allocation3], 1 }
 0x4cf   :  { %1538 = vsyncpa [#allocation6], 1 }
 0x4d0   :  { %1539 = vsyncpa [#allocation4], 1 }
 0x4d1   :  { %1540 = vsyncpa [#allocation10], 1 }

</bundles_post_ra>
